<compile_context>
chip_gen: v5e
topology: v5e:2x2
jax: 0.10.0
libtpu: 0.0.40
codegen_flags: <defaults>
</compile_context>

<pallas_src>
import jax
import jax.numpy as jnp
from jax.experimental import pallas as pl
from jax.experimental.pallas import tpu as pltpu

IN_FEATURES = 28 * 28   # 784
H1, H2 = 512, 256
N_OUT = 5
N_PAD = 128             # lane-dense padded output width
TM_TARGET = 512         # target batch-tile rows (amortizes ~0.35 us/step overhead)


def _leaky_relu(x, slope=0.2):
    return jnp.where(x > 0, x, slope * x)


def discriminator_kernel(x_ref, w1_ref, b1_ref, w2_ref, b2_ref, w3_ref, b3_ref, o_ref):
    # x: (TM, 784) f32    w1: (784, 512) bf16   b1: (1, 512) f32
    # w2: (512, 256) bf16 b2: (1, 256) f32
    # w3: (256, 128) bf16 b3: (1, 128) f32      o: (TM, 128) bf16
    x = x_ref[...].astype(jnp.bfloat16)     # cast in VMEM; avoids a wrapper HBM pass

    h1 = jnp.dot(x, w1_ref[...], preferred_element_type=jnp.float32) + b1_ref[...]
    h1 = _leaky_relu(h1).astype(jnp.bfloat16)

    h2 = jnp.dot(h1, w2_ref[...], preferred_element_type=jnp.float32) + b2_ref[...]
    h2 = _leaky_relu(h2).astype(jnp.bfloat16)

    out = jnp.dot(h2, w3_ref[...], preferred_element_type=jnp.float32) + b3_ref[...]
    o_ref[...] = out.astype(o_ref.dtype)


def _choose_tiling(B):
    """Pick (TM, n_steps). Big tiles to amortize per-step overhead, >= 2 (even)
    steps when there is enough work so both v7x TensorCores are used, and no
    fixed-size batch padding (ragged last tile is masked by Pallas)."""
    if B <= 8:
        return B, 1                       # single full-array block, zero padding
    nsteps = max(2, pl.cdiv(B, TM_TARGET))
    if nsteps % 2 == 1:
        nsteps += 1                       # even step count -> balanced megacore split
    tm = pl.cdiv(B, nsteps)
    tm = ((tm + 7) // 8) * 8              # sublane multiple
    return tm, pl.cdiv(B, tm)


@jax.jit
def discriminator_forward(img, params):
    """img: (B, 1, 28, 28) float32 NCHW.  Returns (B, 5) float32."""
    w1, b1, w2, b2, w3, b3 = params
    B = img.shape[0]

    # Flatten exactly like torch's .view(B, -1).  Stays f32 in HBM: no pad/cast copy.
    x = img.reshape(B, IN_FEATURES).astype(jnp.float32)

    TM, nsteps = _choose_tiling(B)

    # Weights: bf16 (w3/b3 lane-padded to 128 output columns).  Biases stay f32.
    w1b = w1.astype(jnp.bfloat16)
    w2b = w2.astype(jnp.bfloat16)
    w3b = jnp.pad(w3, ((0, 0), (0, N_PAD - N_OUT))).astype(jnp.bfloat16)
    b1f = b1.reshape(1, H1).astype(jnp.float32)
    b2f = b2.reshape(1, H2).astype(jnp.float32)
    b3f = jnp.pad(b3.reshape(1, N_OUT), ((0, 0), (0, N_PAD - N_OUT))).astype(jnp.float32)

    resident = lambda i: (0, 0)   # weights/biases: same block every grid step

    flops = 2 * B * (IN_FEATURES * H1 + H1 * H2 + H2 * N_PAD)
    bytes_accessed = (
        B * IN_FEATURES * 4                                   # x read (f32)
        + (IN_FEATURES * H1 + H1 * H2 + H2 * N_PAD) * 2       # bf16 weights
        + (H1 + H2 + N_PAD) * 4                               # f32 biases
        + B * N_PAD * 2                                       # bf16 output slab
    )

    out_padded = pl.pallas_call(
        discriminator_kernel,
        out_shape=jax.ShapeDtypeStruct((B, N_PAD), jnp.bfloat16),
        grid=(nsteps,),
        in_specs=[
            pl.BlockSpec((TM, IN_FEATURES), lambda i: (i, 0)),   # x tile (pipelined)
            pl.BlockSpec((IN_FEATURES, H1), resident),           # w1
            pl.BlockSpec((1, H1), resident),                     # b1
            pl.BlockSpec((H1, H2), resident),                    # w2
            pl.BlockSpec((1, H2), resident),                     # b2
            pl.BlockSpec((H2, N_PAD), resident),                 # w3 (lane-padded)
            pl.BlockSpec((1, N_PAD), resident),                  # b3 (lane-padded)
        ],
        out_specs=pl.BlockSpec((TM, N_PAD), lambda i: (i, 0)),
        compiler_params=pltpu.CompilerParams(
            dimension_semantics=("parallel",),
            vmem_limit_bytes=32 * 1024 * 1024,
        ),
        cost_estimate=pl.CostEstimate(
            flops=flops, transcendentals=0, bytes_accessed=bytes_accessed),
    )(x, w1b, b1f, w2b, b2f, w3b, b3f)

    return out_padded[:, :N_OUT].astype(jnp.float32)


def init_params(key):
    """Deterministic init matching PyTorch nn.Linear default:
    U(-1/sqrt(fan_in), 1/sqrt(fan_in)) for both weight and bias.
    Weights stored (in_features, out_features) so y = x @ W + b == torch x @ W.T + b."""
    dims = [(IN_FEATURES, H1), (H1, H2), (H2, N_OUT)]
    params = []
    for (fan_in, fan_out) in dims:
        key, kw, kb = jax.random.split(key, 3)
        bound = 1.0 / jnp.sqrt(fan_in)
        w = jax.random.uniform(kw, (fan_in, fan_out), jnp.float32, -bound, bound)
        b = jax.random.uniform(kb, (1, fan_out), jnp.float32, -bound, bound)
        params += [w, b]
    return tuple(params)


def _reference_forward(img, params):
    """Plain-JAX f32 reference for correctness check."""
    x = img.reshape(img.shape[0], -1)
    w1, b1, w2, b2, w3, b3 = params
    h = x @ w1 + b1
    h = jnp.where(h > 0, h, 0.2 * h)
    h = h @ w2 + b2
    h = jnp.where(h > 0, h, 0.2 * h)
    return h @ w3 + b3


if __name__ == "__main__":
    key = jax.random.PRNGKey(0)
    k_params, k_img = jax.random.split(key)

    params = init_params(k_params)
    img = jax.random.normal(k_img, (2, 1, 28, 28), dtype=jnp.float32)

    out = discriminator_forward(img, params)
    out = jax.block_until_ready(out)

    ref = _reference_forward(img, params)
    assert out.shape == (2, 5)
    # bf16 matmuls (f32 accumulation) + bf16 output slab -> loosened tolerance.
    assert jnp.allclose(out, ref, atol=5e-2, rtol=5e-2)

    print("KERNEL_OK")
</pallas_src>

<mosaic_0001>
module attributes {stable_mosaic.version = 11 : i64} {
  func.func @discriminator_kernel(%arg0: i32, %arg1: memref<2x784xf32, #tpu.memory_space<vmem>>, %arg2: memref<784x512xbf16, #tpu.memory_space<vmem>>, %arg3: memref<1x512xf32, #tpu.memory_space<vmem>>, %arg4: memref<512x256xbf16, #tpu.memory_space<vmem>>, %arg5: memref<1x256xf32, #tpu.memory_space<vmem>>, %arg6: memref<256x128xbf16, #tpu.memory_space<vmem>>, %arg7: memref<1x128xf32, #tpu.memory_space<vmem>>, %arg8: memref<2x128xbf16, #tpu.memory_space<vmem>>) attributes {dimension_semantics = [#tpu.dimension_semantics<parallel>], iteration_bounds = array<i64: 1>, scalar_prefetch = 0 : i64, scratch_operands = 0 : i64, tpu.core_type = #tpu.core_type<tc>, window_params = [{transform_indices = @transform_0, window_bounds = array<i64: 2, 784>}, {pipeline_mode = #tpu.pipeline_mode<synchronous>, transform_indices = @transform_1, window_bounds = array<i64: 784, 512>}, {pipeline_mode = #tpu.pipeline_mode<synchronous>, transform_indices = @transform_2, window_bounds = array<i64: 1, 512>}, {pipeline_mode = #tpu.pipeline_mode<synchronous>, transform_indices = @transform_3, window_bounds = array<i64: 512, 256>}, {pipeline_mode = #tpu.pipeline_mode<synchronous>, transform_indices = @transform_4, window_bounds = array<i64: 1, 256>}, {pipeline_mode = #tpu.pipeline_mode<synchronous>, transform_indices = @transform_5, window_bounds = array<i64: 256, 128>}, {pipeline_mode = #tpu.pipeline_mode<synchronous>, transform_indices = @transform_6, window_bounds = array<i64: 1, 128>}, {transform_indices = @transform_7, window_bounds = array<i64: 2, 128>}]} {
    %c0 = arith.constant 0 : index
    %c0_0 = arith.constant 0 : index
    %0 = vector.load %arg1[%c0, %c0_0] : memref<2x784xf32, #tpu.memory_space<vmem>>, vector<2x784xf32>
    %1 = arith.truncf %0 : vector<2x784xf32> to vector<2x784xbf16>
    %c0_1 = arith.constant 0 : index
    %c0_2 = arith.constant 0 : index
    %2 = vector.load %arg2[%c0_1, %c0_2] : memref<784x512xbf16, #tpu.memory_space<vmem>>, vector<784x512xbf16>
    %cst = arith.constant dense<0.000000e+00> : vector<2x512xf32>
    %3 = tpu.matmul %1, %2, %cst {dimension_numbers = #tpu.dot_dimension_numbers<[1], [0], [0], [1], [0, 0, 1, 1], [], []>} : vector<2x784xbf16>, vector<784x512xbf16>, vector<2x512xf32> -> vector<2x512xf32>
    %c0_3 = arith.constant 0 : index
    %c0_4 = arith.constant 0 : index
    %4 = vector.load %arg3[%c0_3, %c0_4] : memref<1x512xf32, #tpu.memory_space<vmem>>, vector<1x512xf32>
    %5 = vector.broadcast %4 : vector<1x512xf32> to vector<2x512xf32>
    %6 = arith.addf %3, %5 : vector<2x512xf32>
    %cst_5 = arith.constant 0.000000e+00 : f32
    %7 = vector.broadcast %cst_5 : f32 to vector<2x512xf32>
    %8 = arith.cmpf ogt, %6, %7 : vector<2x512xf32>
    %cst_6 = arith.constant 2.000000e-01 : f32
    %9 = vector.broadcast %cst_6 : f32 to vector<2x512xf32>
    %10 = arith.mulf %9, %6 : vector<2x512xf32>
    %11 = arith.select %8, %6, %10 : vector<2x512xi1>, vector<2x512xf32>
    %12 = arith.truncf %11 : vector<2x512xf32> to vector<2x512xbf16>
    %c0_7 = arith.constant 0 : index
    %c0_8 = arith.constant 0 : index
    %13 = vector.load %arg4[%c0_7, %c0_8] : memref<512x256xbf16, #tpu.memory_space<vmem>>, vector<512x256xbf16>
    %cst_9 = arith.constant dense<0.000000e+00> : vector<2x256xf32>
    %14 = tpu.matmul %12, %13, %cst_9 {dimension_numbers = #tpu.dot_dimension_numbers<[1], [0], [0], [1], [0, 0, 1, 1], [], []>} : vector<2x512xbf16>, vector<512x256xbf16>, vector<2x256xf32> -> vector<2x256xf32>
    %c0_10 = arith.constant 0 : index
    %c0_11 = arith.constant 0 : index
    %15 = vector.load %arg5[%c0_10, %c0_11] : memref<1x256xf32, #tpu.memory_space<vmem>>, vector<1x256xf32>
    %16 = vector.broadcast %15 : vector<1x256xf32> to vector<2x256xf32>
    %17 = arith.addf %14, %16 : vector<2x256xf32>
    %cst_12 = arith.constant 0.000000e+00 : f32
    %18 = vector.broadcast %cst_12 : f32 to vector<2x256xf32>
    %19 = arith.cmpf ogt, %17, %18 : vector<2x256xf32>
    %cst_13 = arith.constant 2.000000e-01 : f32
    %20 = vector.broadcast %cst_13 : f32 to vector<2x256xf32>
    %21 = arith.mulf %20, %17 : vector<2x256xf32>
    %22 = arith.select %19, %17, %21 : vector<2x256xi1>, vector<2x256xf32>
    %23 = arith.truncf %22 : vector<2x256xf32> to vector<2x256xbf16>
    %c0_14 = arith.constant 0 : index
    %c0_15 = arith.constant 0 : index
    %24 = vector.load %arg6[%c0_14, %c0_15] : memref<256x128xbf16, #tpu.memory_space<vmem>>, vector<256x128xbf16>
    %cst_16 = arith.constant dense<0.000000e+00> : vector<2x128xf32>
    %25 = tpu.matmul %23, %24, %cst_16 {dimension_numbers = #tpu.dot_dimension_numbers<[1], [0], [0], [1], [0, 0, 1, 1], [], []>} : vector<2x256xbf16>, vector<256x128xbf16>, vector<2x128xf32> -> vector<2x128xf32>
    %c0_17 = arith.constant 0 : index
    %c0_18 = arith.constant 0 : index
    %26 = vector.load %arg7[%c0_17, %c0_18] : memref<1x128xf32, #tpu.memory_space<vmem>>, vector<1x128xf32>
    %27 = vector.broadcast %26 : vector<1x128xf32> to vector<2x128xf32>
    %28 = arith.addf %25, %27 : vector<2x128xf32>
    %29 = arith.truncf %28 : vector<2x128xf32> to vector<2x128xbf16>
    %c0_19 = arith.constant 0 : index
    %c0_20 = arith.constant 0 : index
    %30 = vector.load %arg8[%c0_19, %c0_20] : memref<2x128xbf16, #tpu.memory_space<vmem>>, vector<2x128xbf16>
    tpu.vector_store %arg8[%c0_19, %c0_20], %29 {strides = array<i32>} : memref<2x128xbf16, #tpu.memory_space<vmem>>, vector<2x128xbf16>,
    return
  }
  func.func @transform_0(%arg0: i32) -> (i32, i32) {
    %c0_i32 = arith.constant 0 : i32
    %c0_i32_0 = arith.constant 0 : i32
    return %arg0, %c0_i32 : i32, i32
  }
  func.func @transform_1(%arg0: i32) -> (i32, i32) {
    %c0_i32 = arith.constant 0 : i32
    %c0_i32_0 = arith.constant 0 : i32
    %c0_i32_1 = arith.constant 0 : i32
    return %c0_i32, %c0_i32_0 : i32, i32
  }
  func.func @transform_2(%arg0: i32) -> (i32, i32) {
    %c0_i32 = arith.constant 0 : i32
    %c0_i32_0 = arith.constant 0 : i32
    %c0_i32_1 = arith.constant 0 : i32
    return %c0_i32, %c0_i32_0 : i32, i32
  }
  func.func @transform_3(%arg0: i32) -> (i32, i32) {
    %c0_i32 = arith.constant 0 : i32
    %c0_i32_0 = arith.constant 0 : i32
    %c0_i32_1 = arith.constant 0 : i32
    return %c0_i32, %c0_i32_0 : i32, i32
  }
  func.func @transform_4(%arg0: i32) -> (i32, i32) {
    %c0_i32 = arith.constant 0 : i32
    %c0_i32_0 = arith.constant 0 : i32
    %c0_i32_1 = arith.constant 0 : i32
    return %c0_i32, %c0_i32_0 : i32, i32
  }
  func.func @transform_5(%arg0: i32) -> (i32, i32) {
    %c0_i32 = arith.constant 0 : i32
    %c0_i32_0 = arith.constant 0 : i32
    %c0_i32_1 = arith.constant 0 : i32
    return %c0_i32, %c0_i32_0 : i32, i32
  }
  func.func @transform_6(%arg0: i32) -> (i32, i32) {
    %c0_i32 = arith.constant 0 : i32
    %c0_i32_0 = arith.constant 0 : i32
    %c0_i32_1 = arith.constant 0 : i32
    return %c0_i32, %c0_i32_0 : i32, i32
  }
  func.func @transform_7(%arg0: i32) -> (i32, i32) {
    %c0_i32 = arith.constant 0 : i32
    %c0_i32_0 = arith.constant 0 : i32
    return %arg0, %c0_i32 : i32, i32
  }
}

</mosaic_0001>

<bundles_post_ra>
// kernel: discriminator_forward.1
= control target key start
LH: loop header
LB: loop body
LE: loop exit
PB: predicated region body
PF: predicated region fallthrough
CT: control target
= control target key end

     0   :  { %vm1241_vm0 = vcmask 130048   ;;  %s5410_s1 = inlined_call_operand.vmem [shape: bf16[784,512], index: 1, kind: input, shape index: {}]   ;;  %s5411_s0 = inlined_call_operand.vmem [shape: f32[2,784], index: 0, kind: input, shape index: {}]   ;;  %s5412_s2 = inlined_call_operand.vmem [shape: f32[1,512], index: 2, kind: input, shape index: {}]   ;;  %s5413_s3 = inlined_call_operand.vmem [shape: bf16[512,256], index: 3, kind: input, shape index: {}]   ;;  %s5414_s4 = inlined_call_operand.vmem [shape: f32[1,256], index: 4, kind: input, shape index: {}]   ;;  %s5415_s6 = inlined_call_operand.vmem [shape: f32[1,128], index: 6, kind: input, shape index: {}]   ;;  %s5416_s5 = inlined_call_operand.vmem [shape: bf16[256,128], index: 5, kind: input, shape index: {}]   ;;  %s5417_s7 = inlined_call_operand.vmem [shape: bf16[2,128], index: 7, kind: output, shape index: {}]  }
   0x1   :  { %v2405_v0 = vld [vmem:[%s5410_s1 + $0xe0] sm:$0xf]  ;;  %v3429_v1 = vld [vmem:[%s5410_s1 + $0xec] sm:$0xf0] }
   0x2   :  { %v2533_v2 = vld [vmem:[%s5410_s1 + $0x1e0] sm:$0xf]  ;;  %v2406_v3 = vor.u32 %v3429_v1, %v2405_v0  ;;  %v3461_v4 = vld [vmem:[%s5410_s1 + $0x1ec] sm:$0xf0] }
   0x3   :  { %v2661_v5 = vld [vmem:[%s5410_s1 + $0x2e0] sm:$0xf]  ;;  %v3493_v6 = vld [vmem:[%s5410_s1 + $0x2ec] sm:$0xf0]  ;;  %v2534_v7 = vor.u32 %v3461_v4, %v2533_v2 }
   0x4   :  { %v2662_v8 = vor.u32 %v3493_v6, %v2661_v5  ;;  %v2789_v9 = vld [vmem:[%s5410_s1 + $0x3e0] sm:$0xf]  ;;  %v3525_v10 = vld [vmem:[%s5410_s1 + $0x3ec] sm:$0xf0]  ;;  %1245 = vmatpush.bf16.msra.mxu0 %v2406_v3 }
   0x5   :  { %v2389_v11 = vld [vmem:[%s5410_s1 + $0xc0] sm:$0xf]  ;;  %v2790_v12 = vor.u32 %v3525_v10, %v2789_v9  ;;  %v3425_v13 = vld [vmem:[%s5410_s1 + $0xcc] sm:$0xf0]  ;;  %1258 = vmatpush.bf16.msra.mxu1 %v2534_v7 }
   0x6   :  { %v2517_v14 = vld [vmem:[%s5410_s1 + $0x1c0] sm:$0xf]  ;;  %v3457_v15 = vld [vmem:[%s5410_s1 + $0x1cc] sm:$0xf0]  ;;  %1271 = vmatpush.bf16.msra.mxu2 %v2662_v8  ;;  %v2390_v16 = vor.u32 %v3425_v13, %v2389_v11 }
   0x7   :  { %v2518_v17 = vor.u32 %v3457_v15, %v2517_v14  ;;  %v2645_v18 = vld [vmem:[%s5410_s1 + $0x2c0] sm:$0xf]  ;;  %v3489_v19 = vld [vmem:[%s5410_s1 + $0x2cc] sm:$0xf0]  ;;  %1284 = vmatpush.bf16.msra.mxu3 %v2790_v12 }
   0x8   :  { %v2773_v20 = vld [vmem:[%s5410_s1 + $0x3c0] sm:$0xf]  ;;  %v2646_v21 = vor.u32 %v3489_v19, %v2645_v18  ;;  %v3521_v22 = vld [vmem:[%s5410_s1 + $0x3cc] sm:$0xf0]  ;;  %1246 = vmatpush.bf16.msra.mxu0 %v2390_v16 }
   0x9   :  { %v2373_v23 = vld [vmem:[%s5410_s1 + $0xa0] sm:$0xf]  ;;  %v3421_v24 = vld [vmem:[%s5410_s1 + $0xac] sm:$0xf0]  ;;  %v2774_v25 = vor.u32 %v3521_v22, %v2773_v20  ;;  %1259 = vmatpush.bf16.msra.mxu1 %v2518_v17 }
   0xa   :  { %v2501_v26 = vld [vmem:[%s5410_s1 + $0x1a0] sm:$0xf]  ;;  %v3453_v27 = vld [vmem:[%s5410_s1 + $0x1ac] sm:$0xf0]  ;;  %v2374_v29 = vor.u32 %v3421_v24, %v2373_v23  ;;  %1272 = vmatpush.bf16.msra.mxu2 %v2646_v21 }
   0xb   :  { %v2629_v28 = vld [vmem:[%s5410_s1 + $0x2a0] sm:$0xf]  ;;  %v3485_v30 = vld [vmem:[%s5410_s1 + $0x2ac] sm:$0xf0]  ;;  %v2502_v33 = vor.u32 %v3453_v27, %v2501_v26  ;;  %1285 = vmatpush.bf16.msra.mxu3 %v2774_v25 }
   0xc   :  { %v2757_v31 = vld [vmem:[%s5410_s1 + $0x3a0] sm:$0xf]  ;;  %v3517_v32 = vld [vmem:[%s5410_s1 + $0x3ac] sm:$0xf0]  ;;  %v2630_v34 = vor.u32 %v3485_v30, %v2629_v28  ;;  %1247 = vmatpush.bf16.msra.mxu0 %v2374_v29 }
   0xd   :  { %v2357_v35 = vld [vmem:[%s5410_s1 + $0x80] sm:$0xf]  ;;  %v3417_v36 = vld [vmem:[%s5410_s1 + $0x8c] sm:$0xf0]  ;;  %v2758_v38 = vor.u32 %v3517_v32, %v2757_v31  ;;  %1260 = vmatpush.bf16.msra.mxu1 %v2502_v33 }
   0xe   :  { %v2485_v37 = vld [vmem:[%s5410_s1 + $0x180] sm:$0xf]  ;;  %v3449_v39 = vld [vmem:[%s5410_s1 + $0x18c] sm:$0xf0]  ;;  %v2358_v44 = vor.u32 %v3417_v36, %v2357_v35  ;;  %1273 = vmatpush.bf16.msra.mxu2 %v2630_v34  ;;  %v3427_v34 = vld [vmem:[%s5410_s1 + $0xe4] sm:$0xf] }
   0xf   :  { %v2613_v40 = vld [vmem:[%s5410_s1 + $0x280] sm:$0xf]  ;;  %v3481_v41 = vld [vmem:[%s5410_s1 + $0x28c] sm:$0xf0]  ;;  %v2486_v45 = vor.u32 %v3449_v39, %v2485_v37  ;;  %1286 = vmatpush.bf16.msra.mxu3 %v2758_v38  ;;  %v2407_v35 = vld [vmem:[%s5410_s1 + $0xf0] sm:$0xf0] }
  0x10   :  { %v2741_v42 = vld [vmem:[%s5410_s1 + $0x380] sm:$0xf]  ;;  %v3513_v43 = vld [vmem:[%s5410_s1 + $0x38c] sm:$0xf0]  ;;  %v2614_v46 = vor.u32 %v3481_v41, %v2613_v40  ;;  %1248 = vmatpush.bf16.msra.mxu0 %v2358_v44  ;;  %v3459_v40 = vld [vmem:[%s5410_s1 + $0x1e4] sm:$0xf] }
  0x11   :  { %v2341_v47 = vld [vmem:[%s5410_s1 + $0x60] sm:$0xf]  ;;  %v3413_v48 = vld [vmem:[%s5410_s1 + $0x6c] sm:$0xf0]  ;;  %v2742_v50 = vor.u32 %v3513_v43, %v2741_v42  ;;  %1261 = vmatpush.bf16.msra.mxu1 %v2486_v45  ;;  %v2535_v41 = vld [vmem:[%s5410_s1 + $0x1f0] sm:$0xf0] }
  0x12   :  { %v2469_v49 = vld [vmem:[%s5410_s1 + $0x160] sm:$0xf]  ;;  %v3445_v51 = vld [vmem:[%s5410_s1 + $0x16c] sm:$0xf0]  ;;  %v2342_v56 = vor.u32 %v3413_v48, %v2341_v47  ;;  %1274 = vmatpush.bf16.msra.mxu2 %v2614_v46  ;;  %v2410_v48 = vor.u32 %v3427_v34, %v2407_v35 }
  0x13   :  { %v2597_v52 = vld [vmem:[%s5410_s1 + $0x260] sm:$0xf]  ;;  %v3477_v53 = vld [vmem:[%s5410_s1 + $0x26c] sm:$0xf0]  ;;  %v2470_v57 = vor.u32 %v3445_v51, %v2469_v49  ;;  %1287 = vmatpush.bf16.msra.mxu3 %v2742_v50  ;;  %v3423_v50 = vld [vmem:[%s5410_s1 + $0xc4] sm:$0xf] }
  0x14   :  { %v2725_v54 = vld [vmem:[%s5410_s1 + $0x360] sm:$0xf]  ;;  %v3509_v55 = vld [vmem:[%s5410_s1 + $0x36c] sm:$0xf0]  ;;  %v2598_v58 = vor.u32 %v3477_v53, %v2597_v52  ;;  %1249 = vmatpush.bf16.msra.mxu0 %v2342_v56  ;;  %v2391_v51 = vld [vmem:[%s5410_s1 + $0xd0] sm:$0xf0] }
  0x15   :  { %v2325_v59 = vld [vmem:[%s5410_s1 + $0x40] sm:$0xf]  ;;  %v3409_v60 = vld [vmem:[%s5410_s1 + $0x4c] sm:$0xf0]  ;;  %v2726_v62 = vor.u32 %v3509_v55, %v2725_v54  ;;  %1262 = vmatpush.bf16.msra.mxu1 %v2470_v57 }
  0x16   :  { %v2453_v61 = vld [vmem:[%s5410_s1 + $0x140] sm:$0xf]  ;;  %v3441_v63 = vld [vmem:[%s5410_s1 + $0x14c] sm:$0xf0]  ;;  %v2326_v4 = vor.u32 %v3409_v60, %v2325_v59  ;;  %1275 = vmatpush.bf16.msra.mxu2 %v2598_v58  ;;  %v2538_v59 = vor.u32 %v3459_v40, %v2535_v41 }
  0x17   :  { %v2581_v0 = vld [vmem:[%s5410_s1 + $0x240] sm:$0xf]  ;;  %v3473_v1 = vld [vmem:[%s5410_s1 + $0x24c] sm:$0xf0]  ;;  %v2454_v6 = vor.u32 %v3441_v63, %v2453_v61  ;;  %1288 = vmatpush.bf16.msra.mxu3 %v2726_v62  ;;  %v3455_v62 = vld [vmem:[%s5410_s1 + $0x1c4] sm:$0xf] }
  0x18   :  { %v2709_v2 = vld [vmem:[%s5410_s1 + $0x340] sm:$0xf]  ;;  %v3505_v3 = vld [vmem:[%s5410_s1 + $0x34c] sm:$0xf0]  ;;  %v2582_v7 = vor.u32 %v3473_v1, %v2581_v0  ;;  %1250 = vmatpush.bf16.msra.mxu0 %v2326_v4  ;;  %v2519_v63 = vld [vmem:[%s5410_s1 + $0x1d0] sm:$0xf0]  ;;  %v2394_v1 = vor.u32 %v3423_v50, %v2391_v51 }
  0x19   :  { %v2309_v5 = vld [vmem:[%s5410_s1 + $0x20] sm:$0xf]  ;;  %v3405_v8 = vld [vmem:[%s5410_s1 + $0x2c] sm:$0xf0]  ;;  %v2710_v11 = vor.u32 %v3505_v3, %v2709_v2  ;;  %1263 = vmatpush.bf16.msra.mxu1 %v2454_v6 }
  0x1a   :  { %v2437_v9 = vld [vmem:[%s5410_s1 + $0x120] sm:$0xf]  ;;  %v3437_v10 = vld [vmem:[%s5410_s1 + $0x12c] sm:$0xf0]  ;;  %v2310_v18 = vor.u32 %v3405_v8, %v2309_v5  ;;  %1276 = vmatpush.bf16.msra.mxu2 %v2582_v7  ;;  %v3419_v7 = vld [vmem:[%s5410_s1 + $0xa4] sm:$0xf] }
  0x1b   :  { %v2565_v12 = vld [vmem:[%s5410_s1 + $0x220] sm:$0xf]  ;;  %v3469_v13 = vld [vmem:[%s5410_s1 + $0x22c] sm:$0xf0]  ;;  %v2438_v22 = vor.u32 %v3437_v10, %v2437_v9  ;;  %1289 = vmatpush.bf16.msra.mxu3 %v2710_v11  ;;  %v2375_v8 = vld [vmem:[%s5410_s1 + $0xb0] sm:$0xf0]  ;;  %v2522_v9 = vor.u32 %v3455_v62, %v2519_v63 }
  0x1c   :  { %v2693_v14 = vld [vmem:[%s5410_s1 + $0x320] sm:$0xf]  ;;  %v3501_v15 = vld [vmem:[%s5410_s1 + $0x32c] sm:$0xf0]  ;;  %v2566_v23 = vor.u32 %v3469_v13, %v2565_v12  ;;  %1251 = vmatpush.bf16.msra.mxu0 %v2310_v18  ;;  %v3451_v11 = vld [vmem:[%s5410_s1 + $0x1a4] sm:$0xf] }
  0x1d   :  { %v2293_v16 = vld [vmem:[%s5410_s1] sm:$0xf]  ;;  %v3401_v17 = vld [vmem:[%s5410_s1 + $0xc] sm:$0xf0]  ;;  %v2694_v26 = vor.u32 %v3501_v15, %v2693_v14  ;;  %1264 = vmatpush.bf16.msra.mxu1 %v2438_v22  ;;  %v2503_v12 = vld [vmem:[%s5410_s1 + $0x1b0] sm:$0xf0]  ;;  %v2378_v14 = vor.u32 %v3419_v7, %v2375_v8 }
  0x1e   :  { %v2421_v19 = vld [vmem:[%s5410_s1 + $0x100] sm:$0xf]  ;;  %v3433_v20 = vld [vmem:[%s5410_s1 + $0x10c] sm:$0xf0]  ;;  %v2294_v33 = vor.u32 %v3401_v17, %v2293_v16  ;;  %1277 = vmatpush.bf16.msra.mxu2 %v2566_v23  ;;  %v2506_v22 = vor.u32 %v3451_v11, %v2503_v12  ;;  %v2311_v62 = vld [vmem:[%s5410_s1 + $0x30] sm:$0xf0] }
  0x1f   :  { %v27_v21 = vld [vmem:[%s5411_s0] sm:$0xff]  ;;  %v3465_v25 = vld [vmem:[%s5410_s1 + $0x20c] sm:$0xf0]  ;;  %v2422_v37 = vor.u32 %v3433_v20, %v2421_v19  ;;  %1290 = vmatpush.bf16.msra.mxu3 %v2694_v26  ;;  %v2359_v20 = vld [vmem:[%s5410_s1 + $0x90] sm:$0xf0] }
  0x20   :  { %v2549_v24 = vld [vmem:[%s5410_s1 + $0x200] sm:$0xf]  ;;  %31 = vst [vmem:[#allocation1] ss:$4 sm:$0xff] %v27_v21  ;;  %v3497_v28 = vld [vmem:[%s5410_s1 + $0x30c] sm:$0xf0]  ;;  %1252 = vmatpush.bf16.msra.mxu0 %v2294_v33 }
  0x21   :  { %v2677_v27 = vld [vmem:[%s5410_s1 + $0x300] sm:$0xf]  ;;  %v3557_v30 = vld [vmem:[%s5410_s1 + $0x4ec] sm:$0xf0]  ;;  %v2550_v38 = vor.u32 %v3465_v25, %v2549_v24  ;;  %1265 = vmatpush.bf16.msra.mxu1 %v2422_v37  ;;  %v3415_v19 = vld [vmem:[%s5410_s1 + $0x84] sm:$0xf] }
  0x22   :  { %v2917_v29 = vld [vmem:[%s5410_s1 + $0x4e0] sm:$0xf]  ;;  %v3589_v32 = vld [vmem:[%s5410_s1 + $0x5ec] sm:$0xf0]  ;;  %v2678_v42 = vor.u32 %v3497_v28, %v2677_v27  ;;  %v3447_v21 = vld [vmem:[%s5410_s1 + $0x184] sm:$0xf]  ;;  %v2362_v28 = vor.u32 %v3415_v19, %v2359_v20 }
  0x23   :  { %v3045_v31 = vld [vmem:[%s5410_s1 + $0x5e0] sm:$0xf]  ;;  %v3593_v39 = vld [vmem:[%s5410_s1 + $0x60c] sm:$0xf0]  ;;  %v2918_v43 = vor.u32 %v3557_v30, %v2917_v29  ;;  %1278 = vmatpush.bf16.msra.mxu2 %v2550_v38  ;;  %v2487_v24 = vld [vmem:[%s5410_s1 + $0x190] sm:$0xf0] }
  0x24   :  { %v3061_v36 = vld [vmem:[%s5410_s1 + $0x600] sm:$0xf]  ;;  %v3553_v45 = vld [vmem:[%s5410_s1 + $0x4cc] sm:$0xf0]  ;;  %v3046_v47 = vor.u32 %v3589_v32, %v3045_v31  ;;  %1291 = vmatpush.bf16.msra.mxu3 %v2678_v42  ;;  %v28_v31 = vld [vmem:[%s5411_s0 + $0x8] sm:$0x3f]  ;;  %v2490_v34 = vor.u32 %v3447_v21, %v2487_v24 }
  0x25   :  { %v2901_v44 = vld [vmem:[%s5410_s1 + $0x4c0] sm:$0xf]  ;;  %v3585_v49 = vld [vmem:[%s5410_s1 + $0x5cc] sm:$0xf0]  ;;  %v3062_v55 = vor.u32 %v3593_v39, %v3061_v36  ;;  %1297 = vmatpush.bf16.msrb.mxu0 %v2918_v43  ;;  %v3411_v32 = vld [vmem:[%s5410_s1 + $0x64] sm:$0xf] }
  0x26   :  { %v3029_v46 = vld [vmem:[%s5410_s1 + $0x5c0] sm:$0xf]  ;;  %v2902_v60 = vor.u32 %v3553_v45, %v2901_v44  ;;  %1310 = vmatpush.bf16.msrb.mxu1 %v3046_v47  ;;  %v3549_v3 = vld [vmem:[%s5410_s1 + $0x4ac] sm:$0xf0]  ;;  %v2343_v33 = vld [vmem:[%s5410_s1 + $0x70] sm:$0xf0] }
  0x27   :  { %v36_v52 = vld.sshfl [vmem:[#allocation1 + $0x10] sm:$0xff pattern:$0x73625140]  ;;  %v34_v53 = vld.sshfl [vmem:[#allocation1] sm:$0xff pattern:$0x73625140]  ;;  %v3030_v0 = vor.u32 %v3585_v49, %v3029_v46  ;;  %1330 = vmatpush.bf16.msrb.mxu2 %v3062_v55  ;;  %v2346_v39 = vor.u32 %v3411_v32, %v2343_v33 }
  0x28   :  { %v3959_v54 = vpack.c.bf16 %v36_v52, %v36_v52  ;;  %v3961_v56 = vpack.c.bf16 %v34_v53, %v34_v53  ;;  %v37_v57 = vld.sshfl [vmem:[#allocation1 + $0x18] sm:$0xff pattern:$0x73625140]  ;;  %v35_v58 = vld.sshfl [vmem:[#allocation1 + $0x8] sm:$0xff pattern:$0x73625140]  ;;  %1336 = vmatpush.bf16.msrb.mxu3 %v2410_v48 }
  0x29   :  { %v3963_v61 = vpack.c.bf16 %v37_v57, %v37_v57  ;;  %v2885_v2 = vld [vmem:[%s5410_s1 + $0x4a0] sm:$0xf]  ;;  %v3982_v5 = vpack.c.bf16 %v35_v58, %v35_v58  ;;  %v3581_v6 = vld [vmem:[%s5410_s1 + $0x5ac] sm:$0xf0]  ;;  %1298 = vmatpush.bf16.msrb.mxu0 %v2902_v60  ;;  %33 = vst [vmem:[#allocation1 + $0x20] ss:$4 sm:$0xff] %v28_v31 }
  0x2a   :  { %v3013_v4 = vld [vmem:[%s5410_s1 + $0x5a0] sm:$0xf]  ;;  %1279 = vmatmul.bf16.vlgmr.msra.gmra.mxu2 %v3959_v54  ;;  %1253 = vmatmul.bf16.vlgmr.msra.gmra.mxu0 %v3961_v56  ;;  %v2886_v10 = vor.u32 %v3549_v3, %v2885_v2  ;;  %v3545_v16 = vld [vmem:[%s5410_s1 + $0x48c] sm:$0xf0]  ;;  %v3443_v36 = vld [vmem:[%s5410_s1 + $0x164] sm:$0xf] }
  0x2b   :  { %1292 = vmatmul.bf16.vlgmr.msra.gmra.mxu3 %v3963_v61  ;;  %1349 = vmatpush.bf16.msra.mxu2 %v2538_v59  ;;  %v3014_v13 = vor.u32 %v3581_v6, %v3013_v4  ;;  %v2869_v15 = vld [vmem:[%s5410_s1 + $0x480] sm:$0xf]  ;;  %v3577_v18 = vld [vmem:[%s5410_s1 + $0x58c] sm:$0xf0]  ;;  %v2471_v37 = vld [vmem:[%s5410_s1 + $0x170] sm:$0xf0] }
  0x2c   :  { %1311 = vmatpush.bf16.msrb.mxu1 %v3030_v0  ;;  %1337 = vmatpush.bf16.msrb.mxu3 %v2394_v1  ;;  %v2997_v17 = vld [vmem:[%s5410_s1 + $0x580] sm:$0xf]  ;;  %v2870_v23 = vor.u32 %v3545_v16, %v2869_v15  ;;  %v3541_v26 = vld [vmem:[%s5410_s1 + $0x46c] sm:$0xf0]  ;;  %v3407_v44 = vld [vmem:[%s5410_s1 + $0x44] sm:$0xf]  ;;  %v2474_v47 = vor.u32 %v3443_v36, %v2471_v37 }
  0x2d   :  { %1266 = vmatmul.bf16.vlgmr.msra.gmra.mxu1 %v3982_v5  ;;  %1299 = vmatpush.bf16.msrb.mxu0 %v2886_v10  ;;  %v2853_v25 = vld [vmem:[%s5410_s1 + $0x460] sm:$0xf]  ;;  %v2998_v27 = vor.u32 %v3577_v18, %v2997_v17  ;;  %v3573_v30 = vld [vmem:[%s5410_s1 + $0x56c] sm:$0xf0]  ;;  %v2327_v45 = vld [vmem:[%s5410_s1 + $0x50] sm:$0xf0] }
  0x2e   :  { %v2981_v29 = vld [vmem:[%s5410_s1 + $0x560] sm:$0xf]  ;;  %v2854_v35 = vor.u32 %v3541_v26, %v2853_v25  ;;  %v3537_v41 = vld [vmem:[%s5410_s1 + $0x44c] sm:$0xf0]  ;;  %v3439_v46 = vld [vmem:[%s5410_s1 + $0x144] sm:$0xf]  ;;  %v2330_v53 = vor.u32 %v3407_v44, %v2327_v45 }
  0x2f   :  { %1350 = vmatpush.bf16.msra.mxu2 %v2522_v9  ;;  %v2982_v38 = vor.u32 %v3573_v30, %v2981_v29  ;;  %v2837_v40 = vld [vmem:[%s5410_s1 + $0x440] sm:$0xf]  ;;  %v3569_v43 = vld [vmem:[%s5410_s1 + $0x54c] sm:$0xf0]  ;;  %v2455_v49 = vld [vmem:[%s5410_s1 + $0x150] sm:$0xf0] }
  0x30   :  { %1312 = vmatpush.bf16.msrb.mxu1 %v3014_v13  ;;  %1338 = vmatpush.bf16.msrb.mxu3 %v2378_v14  ;;  %v2965_v42 = vld [vmem:[%s5410_s1 + $0x540] sm:$0xf]  ;;  %v2838_v48 = vor.u32 %v3537_v41, %v2837_v40  ;;  %v3533_v51 = vld [vmem:[%s5410_s1 + $0x42c] sm:$0xf0]  ;;  %v3403_v60 = vld [vmem:[%s5410_s1 + $0x24] sm:$0xf]  ;;  %v2458_v1 = vor.u32 %v3439_v46, %v2455_v49 }
  0x31   :  { %1300 = vmatpush.bf16.msrb.mxu0 %v2870_v23  ;;  %v2821_v50 = vld [vmem:[%s5410_s1 + $0x420] sm:$0xf]  ;;  %v2966_v52 = vor.u32 %v3569_v43, %v2965_v42  ;;  %v40_v57 = vld.sshfl [vmem:[#allocation1 + $0x30] sm:$0xff pattern:$0x73625140]  ;;  %v2314_v8 = vor.u32 %v3403_v60, %v2311_v62 }
  0x32   :  { %v2949_v55 = vld [vmem:[%s5410_s1 + $0x520] sm:$0xf]  ;;  %v3565_v58 = vld [vmem:[%s5410_s1 + $0x52c] sm:$0xf0]  ;;  %v4088_v59 = vpack.c.bf16 %v40_v57, %v40_v57  ;;  %v3435_v63 = vld [vmem:[%s5410_s1 + $0x124] sm:$0xf]  ;;  %v2822_v2 = vor.u32 %v3533_v51, %v2821_v50 }
  0x33   :  { %1351 = vmatpush.bf16.msra.mxu2 %v2506_v22  ;;  %v2439_v0 = vld [vmem:[%s5410_s1 + $0x130] sm:$0xf0]  ;;  %v2805_v3 = vld [vmem:[%s5410_s1 + $0x400] sm:$0xf]  ;;  %v3529_v4 = vld [vmem:[%s5410_s1 + $0x40c] sm:$0xf0]  ;;  %v2950_v7 = vor.u32 %v3565_v58, %v2949_v55 }
  0x34   :  { %1313 = vmatpush.bf16.msrb.mxu1 %v2998_v27  ;;  %1339 = vmatpush.bf16.msrb.mxu3 %v2362_v28  ;;  %v2933_v6 = vld [vmem:[%s5410_s1 + $0x500] sm:$0xf]  ;;  %v3561_v9 = vld [vmem:[%s5410_s1 + $0x50c] sm:$0xf0]  ;;  %v3399_v10 = vld [vmem:[%s5410_s1 + $0x4] sm:$0xf]  ;;  %v2442_v18 = vor.u32 %v3435_v63, %v2439_v0  ;;  %v2806_v19 = vor.u32 %v3529_v4, %v2805_v3 }
  0x35   :  { %1301 = vmatpush.bf16.msrb.mxu0 %v2854_v35  ;;  %v2295_v11 = vld [vmem:[%s5410_s1 + $0x10] sm:$0xf0]  ;;  %v3491_v12 = vld [vmem:[%s5410_s1 + $0x2e4] sm:$0xf]  ;;  %v2934_v22 = vor.u32 %v3561_v9, %v2933_v6 }
  0x36   :  { %v2663_v13 = vld [vmem:[%s5410_s1 + $0x2f0] sm:$0xf0]  ;;  %v3523_v14 = vld [vmem:[%s5410_s1 + $0x3e4] sm:$0xf]  ;;  %v2298_v23 = vor.u32 %v3399_v10, %v2295_v11 }
  0x37   :  { %1352 = vmatpush.bf16.msra.mxu2 %v2490_v34  ;;  %v2791_v15 = vld [vmem:[%s5410_s1 + $0x3f0] sm:$0xf0]  ;;  %v3555_v16 = vld [vmem:[%s5410_s1 + $0x4e4] sm:$0xf]  ;;  %v2666_v26 = vor.u32 %v3491_v12, %v2663_v13 }
  0x38   :  { %1314 = vmatpush.bf16.msrb.mxu1 %v2982_v38  ;;  %1340 = vmatpush.bf16.msrb.mxu3 %v2346_v39  ;;  %v2919_v17 = vld [vmem:[%s5410_s1 + $0x4f0] sm:$0xf0]  ;;  %v38_v20 = vld.sshfl [vmem:[#allocation1 + $0x20] sm:$0xff pattern:$0x73625140]  ;;  %v2794_v27 = vor.u32 %v3523_v14, %v2791_v15 }
  0x39   :  { %1302 = vmatpush.bf16.msrb.mxu0 %v2838_v48  ;;  %v3431_v21 = vld [vmem:[%s5410_s1 + $0x104] sm:$0xf]  ;;  %v2423_v24 = vld [vmem:[%s5410_s1 + $0x110] sm:$0xf0]  ;;  %v2922_v31 = vor.u32 %v3555_v16, %v2919_v17  ;;  %v4155_v32 = vpack.c.bf16 %v38_v20, %v38_v20 }
  0x3a   :  { %3075 = vmatmul.msk.bf16.vlgmr.msrb.gmra.mxu2 %vm1241_vm0, %v4088_v59  ;;  %v39_v25 = vld.sshfl [vmem:[#allocation1 + $0x28] sm:$0xff pattern:$0x73625140]  ;;  %v3587_v28 = vld [vmem:[%s5410_s1 + $0x5e4] sm:$0xf]  ;;  %v2426_v36 = vor.u32 %v3431_v21, %v2423_v24 }
  0x3b   :  { %1353 = vmatpush.bf16.msra.mxu2 %v2474_v47  ;;  %v3047_v29 = vld [vmem:[%s5410_s1 + $0x5f0] sm:$0xf0]  ;;  %v3487_v30 = vld [vmem:[%s5410_s1 + $0x2c4] sm:$0xf]  ;;  %v4166_v37 = vpack.c.bf16 %v39_v25, %v39_v25 }
  0x3c   :  { %1315 = vmatpush.bf16.msrb.mxu1 %v2966_v52  ;;  %1341 = vmatpush.bf16.msrb.mxu3 %v2330_v53  ;;  %v2647_v33 = vld [vmem:[%s5410_s1 + $0x2d0] sm:$0xf0]  ;;  %v3519_v34 = vld [vmem:[%s5410_s1 + $0x3c4] sm:$0xf]  ;;  %v3050_v40 = vor.u32 %v3587_v28, %v3047_v29 }
  0x3d   :  { %1303 = vmatpush.bf16.msrb.mxu0 %v2822_v2  ;;  %v2775_v35 = vld [vmem:[%s5410_s1 + $0x3d0] sm:$0xf0]  ;;  %v3551_v38 = vld [vmem:[%s5410_s1 + $0x4c4] sm:$0xf]  ;;  %v2650_v41 = vor.u32 %v3487_v30, %v2647_v33 }
  0x3e   :  { %v2903_v39 = vld [vmem:[%s5410_s1 + $0x4d0] sm:$0xf0]  ;;  %v2778_v42 = vor.u32 %v3519_v34, %v2775_v35  ;;  %v3583_v43 = vld [vmem:[%s5410_s1 + $0x5c4] sm:$0xf] }
  0x3f   :  { %1354 = vmatpush.bf16.msra.mxu2 %v2458_v1  ;;  %v3031_v44 = vld [vmem:[%s5410_s1 + $0x5d0] sm:$0xf0]  ;;  %v3483_v45 = vld [vmem:[%s5410_s1 + $0x2a4] sm:$0xf]  ;;  %v2906_v46 = vor.u32 %v3551_v38, %v2903_v39 }
  0x40   :  { %1316 = vmatpush.bf16.msrb.mxu1 %v2950_v7  ;;  %1342 = vmatpush.bf16.msrb.mxu3 %v2314_v8  ;;  %v2631_v47 = vld [vmem:[%s5410_s1 + $0x2b0] sm:$0xf0]  ;;  %v3515_v48 = vld [vmem:[%s5410_s1 + $0x3a4] sm:$0xf]  ;;  %v3034_v52 = vor.u32 %v3583_v43, %v3031_v44 }
  0x41   :  { %1304 = vmatpush.bf16.msrb.mxu0 %v2806_v19  ;;  %v2759_v49 = vld [vmem:[%s5410_s1 + $0x3b0] sm:$0xf0]  ;;  %v3547_v50 = vld [vmem:[%s5410_s1 + $0x4a4] sm:$0xf]  ;;  %v2634_v53 = vor.u32 %v3483_v45, %v2631_v47 }
  0x42   :  { %v2887_v51 = vld [vmem:[%s5410_s1 + $0x4b0] sm:$0xf0]  ;;  %v2762_v55 = vor.u32 %v3515_v48, %v2759_v49  ;;  %v3579_v57 = vld [vmem:[%s5410_s1 + $0x5a4] sm:$0xf] }
  0x43   :  { %1355 = vmatpush.bf16.msra.mxu2 %v2442_v18  ;;  %v3015_v58 = vld [vmem:[%s5410_s1 + $0x5b0] sm:$0xf0]  ;;  %v3479_v60 = vld [vmem:[%s5410_s1 + $0x284] sm:$0xf]  ;;  %v2890_v62 = vor.u32 %v3547_v50, %v2887_v51 }
  0x44   :  { %1317 = vmatpush.bf16.msrb.mxu1 %v2934_v22  ;;  %1343 = vmatpush.bf16.msrb.mxu3 %v2298_v23  ;;  %v2615_v63 = vld [vmem:[%s5410_s1 + $0x290] sm:$0xf0]  ;;  %v3511_v0 = vld [vmem:[%s5410_s1 + $0x384] sm:$0xf]  ;;  %v3018_v4 = vor.u32 %v3579_v57, %v3015_v58  ;;  %v2413_v57 = vld [vmem:[%s5410_s1 + $0xe8] sm:$0xf] }
  0x45   :  { %1362 = vmatpush.bf16.msra.mxu0 %v2666_v26  ;;  %v2743_v1 = vld [vmem:[%s5410_s1 + $0x390] sm:$0xf0]  ;;  %v3543_v2 = vld [vmem:[%s5410_s1 + $0x484] sm:$0xf]  ;;  %v2618_v6 = vor.u32 %v3479_v60, %v2615_v63  ;;  %v3430_v58 = vld [vmem:[%s5410_s1 + $0xf4] sm:$0xf0] }
  0x46   :  { %1305 = vmatmul.bf16.vlgmr.msrb.gmra.mxu0 %v4155_v32  ;;  %v2871_v3 = vld [vmem:[%s5410_s1 + $0x490] sm:$0xf0]  ;;  %v2746_v7 = vor.u32 %v3511_v0, %v2743_v1  ;;  %v3575_v8 = vld [vmem:[%s5410_s1 + $0x584] sm:$0xf]  ;;  %v2541_v60 = vld [vmem:[%s5410_s1 + $0x1e8] sm:$0xf] }
  0x47   :  { %1356 = vmatpush.bf16.msra.mxu2 %v2426_v36  ;;  %1318 = vmatmul.bf16.vlgmr.msrb.gmra.mxu1 %v4166_v37  ;;  %v2999_v9 = vld [vmem:[%s5410_s1 + $0x590] sm:$0xf0]  ;;  %v3475_v10 = vld [vmem:[%s5410_s1 + $0x264] sm:$0xf]  ;;  %v2874_v11 = vor.u32 %v3543_v2, %v2871_v3  ;;  %v3462_v63 = vld [vmem:[%s5410_s1 + $0x1f4] sm:$0xf0] }
  0x48   :  { %1375 = vmatpush.bf16.msra.mxu1 %v2794_v27  ;;  %1388 = vmatpush.bf16.msra.mxu3 %v2922_v31  ;;  %v2599_v12 = vld [vmem:[%s5410_s1 + $0x270] sm:$0xf0]  ;;  %v3507_v13 = vld [vmem:[%s5410_s1 + $0x364] sm:$0xf]  ;;  %v3002_v17 = vor.u32 %v3575_v8, %v2999_v9  ;;  %v2414_v8 = vor.u32 %v3430_v58, %v2413_v57  ;;  %v2797_v9 = vld [vmem:[%s5410_s1 + $0x3e8] sm:$0xf] }
  0x49   :  { %1344 = vmatmul.bf16.vlgmr.msrb.gmra.mxu3 %v3961_v56  ;;  %1363 = vmatpush.bf16.msra.mxu0 %v2650_v41  ;;  %v2727_v14 = vld [vmem:[%s5410_s1 + $0x370] sm:$0xf0]  ;;  %v3539_v15 = vld [vmem:[%s5410_s1 + $0x464] sm:$0xf]  ;;  %v2602_v18 = vor.u32 %v3475_v10, %v2599_v12  ;;  %v3526_v10 = vld [vmem:[%s5410_s1 + $0x3f4] sm:$0xf0]  ;;  %v2542_v12 = vor.u32 %v3462_v63, %v2541_v60 }
  0x4a   :  { %1357 = vmatmul.bf16.vlgmr.msra.gmra.mxu2 %v3982_v5  ;;  %v2855_v16 = vld [vmem:[%s5410_s1 + $0x470] sm:$0xf0]  ;;  %v2730_v19 = vor.u32 %v3507_v13, %v2727_v14  ;;  %v3571_v20 = vld [vmem:[%s5410_s1 + $0x564] sm:$0xf]  ;;  %v3426_v13 = vld [vmem:[%s5410_s1 + $0xd4] sm:$0xf0] }
  0x4b   :  { %1401 = vmatpush.bf16.msrb.mxu2 %v3050_v40  ;;  %v2983_v21 = vld [vmem:[%s5410_s1 + $0x570] sm:$0xf0]  ;;  %v3471_v22 = vld [vmem:[%s5410_s1 + $0x244] sm:$0xf]  ;;  %v2858_v23 = vor.u32 %v3539_v15, %v2855_v16  ;;  %v2669_v15 = vld [vmem:[%s5410_s1 + $0x2e8] sm:$0xf] }
  0x4c   :  { %1376 = vmatpush.bf16.msra.mxu1 %v2778_v42  ;;  %1389 = vmatpush.bf16.msra.mxu3 %v2906_v46  ;;  %v2583_v24 = vld [vmem:[%s5410_s1 + $0x250] sm:$0xf0]  ;;  %v3503_v25 = vld [vmem:[%s5410_s1 + $0x344] sm:$0xf]  ;;  %v2986_v29 = vor.u32 %v3571_v20, %v2983_v21  ;;  %v3494_v16 = vld [vmem:[%s5410_s1 + $0x2f4] sm:$0xf0]  ;;  %v2798_v20 = vor.u32 %v3526_v10, %v2797_v9 }
  0x4d   :  { %1364 = vmatpush.bf16.msra.mxu0 %v2634_v53  ;;  %v2711_v26 = vld [vmem:[%s5410_s1 + $0x350] sm:$0xf0]  ;;  %v3535_v27 = vld [vmem:[%s5410_s1 + $0x444] sm:$0xf]  ;;  %v2586_v30 = vor.u32 %v3471_v22, %v2583_v24  ;;  %v2781_v22 = vld [vmem:[%s5410_s1 + $0x3c8] sm:$0xf] }
  0x4e   :  { %v2839_v28 = vld [vmem:[%s5410_s1 + $0x450] sm:$0xf0]  ;;  %v2714_v31 = vor.u32 %v3503_v25, %v2711_v26  ;;  %v3567_v33 = vld [vmem:[%s5410_s1 + $0x544] sm:$0xf]  ;;  %v2381_v24 = vld [vmem:[%s5410_s1 + $0xa8] sm:$0xf]  ;;  %v2670_v25 = vor.u32 %v3494_v16, %v2669_v15 }
  0x4f   :  { %1402 = vmatpush.bf16.msrb.mxu2 %v3034_v52  ;;  %v2967_v34 = vld [vmem:[%s5410_s1 + $0x550] sm:$0xf0]  ;;  %v3467_v35 = vld [vmem:[%s5410_s1 + $0x224] sm:$0xf]  ;;  %v2842_v36 = vor.u32 %v3535_v27, %v2839_v28  ;;  %v3422_v27 = vld [vmem:[%s5410_s1 + $0xb4] sm:$0xf0] }
  0x50   :  { %1377 = vmatpush.bf16.msra.mxu1 %v2762_v55  ;;  %1390 = vmatpush.bf16.msra.mxu3 %v2890_v62  ;;  %v2567_v38 = vld [vmem:[%s5410_s1 + $0x230] sm:$0xf0]  ;;  %v3499_v39 = vld [vmem:[%s5410_s1 + $0x324] sm:$0xf]  ;;  %v2970_v43 = vor.u32 %v3567_v33, %v2967_v34  ;;  %v2653_v28 = vld [vmem:[%s5410_s1 + $0x2c8] sm:$0xf]  ;;  %v2382_v34 = vor.u32 %v3422_v27, %v2381_v24 }
  0x51   :  { %1365 = vmatpush.bf16.msra.mxu0 %v2618_v6  ;;  %v2695_v40 = vld [vmem:[%s5410_s1 + $0x330] sm:$0xf0]  ;;  %v3531_v41 = vld [vmem:[%s5410_s1 + $0x424] sm:$0xf]  ;;  %v2570_v46 = vor.u32 %v3467_v35, %v2567_v38  ;;  %v2765_v35 = vld [vmem:[%s5410_s1 + $0x3a8] sm:$0xf] }
  0x52   :  { %v2823_v42 = vld [vmem:[%s5410_s1 + $0x430] sm:$0xf0]  ;;  %v3563_v44 = vld [vmem:[%s5410_s1 + $0x524] sm:$0xf]  ;;  %v2698_v47 = vor.u32 %v3499_v39, %v2695_v40  ;;  %v2365_v38 = vld [vmem:[%s5410_s1 + $0x88] sm:$0xf] }
  0x53   :  { %1403 = vmatpush.bf16.msrb.mxu2 %v3018_v4  ;;  %v2951_v45 = vld [vmem:[%s5410_s1 + $0x530] sm:$0xf0]  ;;  %v3463_v48 = vld [vmem:[%s5410_s1 + $0x204] sm:$0xf]  ;;  %v2826_v51 = vor.u32 %v3531_v41, %v2823_v42  ;;  %v3418_v41 = vld [vmem:[%s5410_s1 + $0x94] sm:$0xf0] }
  0x54   :  { %1378 = vmatpush.bf16.msra.mxu1 %v2746_v7  ;;  %1391 = vmatpush.bf16.msra.mxu3 %v2874_v11  ;;  %v2551_v49 = vld [vmem:[%s5410_s1 + $0x210] sm:$0xf0]  ;;  %v3495_v50 = vld [vmem:[%s5410_s1 + $0x304] sm:$0xf]  ;;  %v2954_v62 = vor.u32 %v3563_v44, %v2951_v45  ;;  %v2397_v11 = vld [vmem:[%s5410_s1 + $0xc8] sm:$0xf] }
  0x55   :  { %1366 = vmatpush.bf16.msra.mxu0 %v2602_v18  ;;  %v2679_v52 = vld [vmem:[%s5410_s1 + $0x310] sm:$0xf0]  ;;  %v3527_v53 = vld [vmem:[%s5410_s1 + $0x404] sm:$0xf]  ;;  %v2554_v2 = vor.u32 %v3463_v48, %v2551_v49  ;;  %v2525_v18 = vld [vmem:[%s5410_s1 + $0x1c8] sm:$0xf]  ;;  %v2398_v21 = vor.u32 %v3426_v13, %v2397_v11 }
  0x56   :  { %v2807_v55 = vld [vmem:[%s5410_s1 + $0x410] sm:$0xf0]  ;;  %v3591_v0 = vld [vmem:[%s5410_s1 + $0x604] sm:$0xf]  ;;  %v2682_v3 = vor.u32 %v3495_v50, %v2679_v52  ;;  %v2637_v42 = vld [vmem:[%s5410_s1 + $0x2a8] sm:$0xf] }
  0x57   :  { %1404 = vmatpush.bf16.msrb.mxu2 %v3002_v17  ;;  %v3063_v1 = vld [vmem:[%s5410_s1 + $0x610] sm:$0xf0]  ;;  %v3559_v4 = vld [vmem:[%s5410_s1 + $0x504] sm:$0xf]  ;;  %v2810_v7 = vor.u32 %v3527_v53, %v2807_v55  ;;  %v2493_v44 = vld [vmem:[%s5410_s1 + $0x188] sm:$0xf] }
  0x58   :  { %1379 = vmatpush.bf16.msra.mxu1 %v2730_v19  ;;  %1392 = vmatpush.bf16.msra.mxu3 %v2858_v23  ;;  %v2935_v6 = vld [vmem:[%s5410_s1 + $0x510] sm:$0xf0]  ;;  %v3066_v14 = vor.u32 %v3591_v0, %v3063_v1  ;;  %v3458_v19 = vld [vmem:[%s5410_s1 + $0x1d4] sm:$0xf0]  ;;  %v2749_v48 = vld [vmem:[%s5410_s1 + $0x388] sm:$0xf] }
  0x59   :  { %1367 = vmatpush.bf16.msra.mxu0 %v2586_v30  ;;  %v2938_v17 = vor.u32 %v3559_v4, %v2935_v6  ;;  %v3522_v23 = vld [vmem:[%s5410_s1 + $0x3d4] sm:$0xf0]  ;;  %v2526_v26 = vor.u32 %v3458_v19, %v2525_v18  ;;  %v2509_v30 = vld [vmem:[%s5410_s1 + $0x1a8] sm:$0xf] }
  0x5a   :  { %v2782_v33 = vor.u32 %v3522_v23, %v2781_v22  ;;  %v3450_v45 = vld [vmem:[%s5410_s1 + $0x194] sm:$0xf0]  ;;  %v2349_v50 = vld [vmem:[%s5410_s1 + $0x68] sm:$0xf] }
  0x5b   :  { %1405 = vmatpush.bf16.msrb.mxu2 %v2986_v29  ;;  %v3490_v29 = vld [vmem:[%s5410_s1 + $0x2d4] sm:$0xf0]  ;;  %v2494_v52 = vor.u32 %v3450_v45, %v2493_v44  ;;  %v2621_v55 = vld [vmem:[%s5410_s1 + $0x288] sm:$0xf] }
  0x5c   :  { %1380 = vmatpush.bf16.msra.mxu1 %v2714_v31  ;;  %1393 = vmatpush.bf16.msra.mxu3 %v2842_v36  ;;  %v3454_v31 = vld [vmem:[%s5410_s1 + $0x1b4] sm:$0xf0]  ;;  %v2654_v39 = vor.u32 %v3490_v29, %v2653_v28  ;;  %v2477_v58 = vld [vmem:[%s5410_s1 + $0x168] sm:$0xf] }
  0x5d   :  { %1368 = vmatpush.bf16.msra.mxu0 %v2570_v46  ;;  %v3518_v36 = vld [vmem:[%s5410_s1 + $0x3b4] sm:$0xf0]  ;;  %v2510_v40 = vor.u32 %v3454_v31, %v2509_v30  ;;  %v2733_v0 = vld [vmem:[%s5410_s1 + $0x368] sm:$0xf] }
  0x5e   :  { %v2766_v46 = vor.u32 %v3518_v36, %v2765_v35  ;;  %v3514_v49 = vld [vmem:[%s5410_s1 + $0x394] sm:$0xf0]  ;;  %v2461_v9 = vld [vmem:[%s5410_s1 + $0x148] sm:$0xf] }
  0x5f   :  { %1406 = vmatpush.bf16.msrb.mxu2 %v2970_v43  ;;  %v3486_v43 = vld [vmem:[%s5410_s1 + $0x2b4] sm:$0xf0]  ;;  %v2717_v13 = vld [vmem:[%s5410_s1 + $0x348] sm:$0xf] }
  0x60   :  { %1381 = vmatpush.bf16.msra.mxu1 %v2698_v47  ;;  %1394 = vmatpush.bf16.msra.mxu3 %v2826_v51  ;;  %v2366_v47 = vor.u32 %v3418_v41, %v2365_v38  ;;  %v2638_v51 = vor.u32 %v3486_v43, %v2637_v42  ;;  %v3414_v53 = vld [vmem:[%s5410_s1 + $0x74] sm:$0xf0]  ;;  %v2317_v15 = vld [vmem:[%s5410_s1 + $0x28] sm:$0xf] }
  0x61   :  { %1369 = vmatpush.bf16.msra.mxu0 %v2554_v2  ;;  %v3482_v57 = vld [vmem:[%s5410_s1 + $0x294] sm:$0xf0]  ;;  %v2350_v63 = vor.u32 %v3414_v53, %v2349_v50  ;;  %v2333_v2 = vld [vmem:[%s5410_s1 + $0x48] sm:$0xf] }
  0x62   :  { %v3446_v60 = vld [vmem:[%s5410_s1 + $0x174] sm:$0xf0]  ;;  %v2589_v19 = vld [vmem:[%s5410_s1 + $0x248] sm:$0xf] }
  0x63   :  { %1407 = vmatpush.bf16.msrb.mxu2 %v2954_v62  ;;  %v2750_v62 = vor.u32 %v3514_v49, %v2749_v48  ;;  %v3510_v1 = vld [vmem:[%s5410_s1 + $0x374] sm:$0xf0]  ;;  %v2478_v4 = vor.u32 %v3446_v60, %v2477_v58  ;;  %v2701_v24 = vld [vmem:[%s5410_s1 + $0x328] sm:$0xf] }
  0x64   :  { %1382 = vmatpush.bf16.msra.mxu1 %v2682_v3  ;;  %1395 = vmatpush.bf16.msra.mxu3 %v2810_v7  ;;  %v2622_v3 = vor.u32 %v3482_v57, %v2621_v55  ;;  %v3410_v6 = vld [vmem:[%s5410_s1 + $0x54] sm:$0xf0]  ;;  %v2605_v7 = vld [vmem:[%s5410_s1 + $0x268] sm:$0xf]  ;;  %v2734_v11 = vor.u32 %v3510_v1, %v2733_v0 }
  0x65   :  { %1421 = vmatpush.bf16.msrb.mxu0 %v3066_v14  ;;  %v3442_v10 = vld [vmem:[%s5410_s1 + $0x154] sm:$0xf0]  ;;  %v2301_v27 = vld [vmem:[%s5410_s1 + $0x8] sm:$0xf] }
  0x66   :  { %1370 = vmatmul.bf16.vlgmr.msra.gmra.mxu0 %v3959_v54  ;;  %v3506_v14 = vld [vmem:[%s5410_s1 + $0x354] sm:$0xf0]  ;;  %v2429_v31 = vld [vmem:[%s5410_s1 + $0x108] sm:$0xf] }
  0x67   :  { %1408 = vmatpush.bf16.msrb.mxu2 %v2938_v17  ;;  %1396 = vmatmul.bf16.vlgmr.msra.gmra.mxu3 %v4155_v32  ;;  %v2462_v17 = vor.u32 %v3442_v10, %v2461_v9  ;;  %v3406_v18 = vld [vmem:[%s5410_s1 + $0x34] sm:$0xf0]  ;;  %v2718_v23 = vor.u32 %v3506_v14, %v2717_v13  ;;  %v2925_v36 = vld [vmem:[%s5410_s1 + $0x4e8] sm:$0xf] }
  0x68   :  { %1427 = vmatpush.bf16.msrb.mxu1 %v2414_v8  ;;  %1440 = vmatpush.bf16.msrb.mxu3 %v2542_v12  ;;  %v3478_v8 = vld [vmem:[%s5410_s1 + $0x274] sm:$0xf0]  ;;  %v2334_v12 = vor.u32 %v3410_v6, %v2333_v2  ;;  %v2685_v42 = vld [vmem:[%s5410_s1 + $0x308] sm:$0xf]  ;;  %v3424_v2 = vld [vmem:[%s5410_s1 + $0xcc] sm:$0xf] }
  0x69   :  { %1453 = vmatpush.bf16.msra.mxu0 %v2670_v25  ;;  %1383 = vmatmul.bf16.vlgmr.msra.gmra.mxu1 %v3963_v61  ;;  %v2606_v16 = vor.u32 %v3478_v8, %v2605_v7  ;;  %v3438_v22 = vld [vmem:[%s5410_s1 + $0x134] sm:$0xf0]  ;;  %v2318_v25 = vor.u32 %v3406_v18, %v2317_v15  ;;  %v2909_v50 = vld [vmem:[%s5410_s1 + $0x4c8] sm:$0xf]  ;;  %v3460_v7 = vld [vmem:[%s5410_s1 + $0x1ec] sm:$0xf] }
  0x6a   :  { %1409 = vmatmul.bf16.vlgmr.msrb.gmra.mxu2 %v4166_v37  ;;  %v3402_v28 = vld [vmem:[%s5410_s1 + $0x14] sm:$0xf0]  ;;  %v3069_v57 = vld [vmem:[%s5410_s1 + $0x608] sm:$0xf]  ;;  %v2543_v8 = vld [vmem:[%s5410_s1 + $0x1f8] sm:$0xf0] }
  0x6b   :  { %1466 = vmatpush.bf16.msra.mxu2 %v2798_v20  ;;  %v3474_v20 = vld [vmem:[%s5410_s1 + $0x254] sm:$0xf0]  ;;  %v2302_v43 = vor.u32 %v3402_v28, %v2301_v27  ;;  %v2893_v10 = vld [vmem:[%s5410_s1 + $0x4a8] sm:$0xf]  ;;  %v3420_v15 = vld [vmem:[%s5410_s1 + $0xac] sm:$0xf] }
  0x6c   :  { %1428 = vmatpush.bf16.msrb.mxu1 %v2398_v21  ;;  %1441 = vmatpush.bf16.msrb.mxu3 %v2526_v26  ;;  %v2445_v21 = vld [vmem:[%s5410_s1 + $0x128] sm:$0xf]  ;;  %v3502_v26 = vld [vmem:[%s5410_s1 + $0x334] sm:$0xf0]  ;;  %v2590_v29 = vor.u32 %v3474_v20, %v2589_v19  ;;  %v2383_v18 = vld [vmem:[%s5410_s1 + $0xb8] sm:$0xf0] }
  0x6d   :  { %1454 = vmatpush.bf16.msra.mxu0 %v2654_v39  ;;  %v2446_v30 = vor.u32 %v3438_v22, %v2445_v21  ;;  %v3434_v35 = vld [vmem:[%s5410_s1 + $0x114] sm:$0xf0]  ;;  %v2702_v39 = vor.u32 %v3502_v26, %v2701_v24  ;;  %v3456_v19 = vld [vmem:[%s5410_s1 + $0x1cc] sm:$0xf]  ;;  %v2527_v20 = vld [vmem:[%s5410_s1 + $0x1d8] sm:$0xf0]  ;;  %v2386_v26 = vor.u32 %v3420_v15, %v2383_v18 }
  0x6e   :  { %v3558_v38 = vld [vmem:[%s5410_s1 + $0x4f4] sm:$0xf0]  ;;  %v2430_v48 = vor.u32 %v3434_v35, %v2429_v31  ;;  %v2877_v22 = vld [vmem:[%s5410_s1 + $0x488] sm:$0xf]  ;;  %v3416_v27 = vld [vmem:[%s5410_s1 + $0x8c] sm:$0xf]  ;;  %v2530_v28 = vor.u32 %v3456_v19, %v2527_v20 }
  0x6f   :  { %1467 = vmatpush.bf16.msra.mxu2 %v2782_v33  ;;  %v2573_v33 = vld [vmem:[%s5410_s1 + $0x228] sm:$0xf]  ;;  %v3590_v41 = vld [vmem:[%s5410_s1 + $0x5f4] sm:$0xf0]  ;;  %v2926_v49 = vor.u32 %v3558_v38, %v2925_v36  ;;  %v3452_v31 = vld [vmem:[%s5410_s1 + $0x1ac] sm:$0xf] }
  0x70   :  { %1429 = vmatpush.bf16.msrb.mxu1 %v2382_v34  ;;  %1442 = vmatpush.bf16.msrb.mxu3 %v2510_v40  ;;  %v3470_v34 = vld [vmem:[%s5410_s1 + $0x234] sm:$0xf0]  ;;  %v3053_v40 = vld [vmem:[%s5410_s1 + $0x5e8] sm:$0xf]  ;;  %v2671_v18 = vld [vmem:[%s5410_s1 + $0x2f8] sm:$0xf0] }
  0x71   :  { %1455 = vmatpush.bf16.msra.mxu0 %v2638_v51  ;;  %v3498_v44 = vld [vmem:[%s5410_s1 + $0x314] sm:$0xf0]  ;;  %v2574_v45 = vor.u32 %v3470_v34, %v2573_v33  ;;  %v2557_v51 = vld [vmem:[%s5410_s1 + $0x208] sm:$0xf]  ;;  %v3054_v53 = vor.u32 %v3590_v41, %v3053_v40  ;;  %v2511_v33 = vld [vmem:[%s5410_s1 + $0x1b8] sm:$0xf0] }
  0x72   :  { %v3554_v55 = vld [vmem:[%s5410_s1 + $0x4d4] sm:$0xf0]  ;;  %v2686_v60 = vor.u32 %v3498_v44, %v2685_v42  ;;  %v3005_v24 = vld [vmem:[%s5410_s1 + $0x588] sm:$0xf]  ;;  %v3412_v41 = vld [vmem:[%s5410_s1 + $0x6c] sm:$0xf]  ;;  %v2514_v42 = vor.u32 %v3452_v31, %v2511_v33 }
  0x73   :  { %1468 = vmatpush.bf16.msra.mxu2 %v2766_v46  ;;  %v3428_v46 = vld [vmem:[%s5410_s1 + $0xec] sm:$0xf]  ;;  %v3594_v58 = vld [vmem:[%s5410_s1 + $0x614] sm:$0xf0]  ;;  %v2861_v35 = vld [vmem:[%s5410_s1 + $0x468] sm:$0xf] }
  0x74   :  { %1430 = vmatpush.bf16.msrb.mxu1 %v2366_v47  ;;  %1443 = vmatpush.bf16.msrb.mxu3 %v2494_v52  ;;  %v2415_v47 = vld [vmem:[%s5410_s1 + $0xf8] sm:$0xf0]  ;;  %v3466_v52 = vld [vmem:[%s5410_s1 + $0x214] sm:$0xf0]  ;;  %v3070_v6 = vor.u32 %v3594_v58, %v3069_v57  ;;  %v2989_v38 = vld [vmem:[%s5410_s1 + $0x568] sm:$0xf] }
  0x75   :  { %1456 = vmatpush.bf16.msra.mxu0 %v2622_v3  ;;  %v2418_v0 = vor.u32 %v3428_v46, %v2415_v47  ;;  %v2558_v1 = vor.u32 %v3466_v52, %v2557_v51  ;;  %v2910_v3 = vor.u32 %v3554_v55, %v2909_v50  ;;  %v3582_v13 = vld [vmem:[%s5410_s1 + $0x5b4] sm:$0xf0]  ;;  %v2351_v44 = vld [vmem:[%s5410_s1 + $0x78] sm:$0xf0]  ;;  %v2973_v50 = vld [vmem:[%s5410_s1 + $0x548] sm:$0xf] }
  0x76   :  { %3076 = vmatmul.msk.bf16.vlgmr.msrb.gmra.mxu0 %vm1241_vm0, %v4088_v59  ;;  %v3542_v36 = vld [vmem:[%s5410_s1 + $0x474] sm:$0xf0]  ;;  %v2495_v46 = vld [vmem:[%s5410_s1 + $0x198] sm:$0xf0]  ;;  %v2354_v52 = vor.u32 %v3412_v41, %v2351_v44  ;;  %v2941_v15 = vld [vmem:[%s5410_s1 + $0x508] sm:$0xf] }
  0x77   :  { %1469 = vmatpush.bf16.msra.mxu2 %v2750_v62  ;;  %v3037_v62 = vld [vmem:[%s5410_s1 + $0x5c8] sm:$0xf]  ;;  %v3570_v51 = vld [vmem:[%s5410_s1 + $0x554] sm:$0xf0]  ;;  %v2335_v58 = vld [vmem:[%s5410_s1 + $0x58] sm:$0xf0] }
  0x78   :  { %1431 = vmatpush.bf16.msrb.mxu1 %v2350_v63  ;;  %1444 = vmatpush.bf16.msrb.mxu3 %v2478_v4  ;;  %v3586_v63 = vld [vmem:[%s5410_s1 + $0x5d4] sm:$0xf0]  ;;  %v2399_v4 = vld [vmem:[%s5410_s1 + $0xd8] sm:$0xf0]  ;;  %v3524_v20 = vld [vmem:[%s5410_s1 + $0x3ec] sm:$0xf] }
  0x79   :  { %1457 = vmatpush.bf16.msra.mxu0 %v2606_v16  ;;  %v3038_v9 = vor.u32 %v3586_v63, %v3037_v62  ;;  %v2402_v14 = vor.u32 %v3424_v2, %v2399_v4  ;;  %v2546_v16 = vor.u32 %v3460_v7, %v2543_v8  ;;  %v2479_v62 = vld [vmem:[%s5410_s1 + $0x178] sm:$0xf0]  ;;  %v2974_v63 = vor.u32 %v3570_v51, %v2973_v50  ;;  %v2957_v2 = vld [vmem:[%s5410_s1 + $0x528] sm:$0xf]  ;;  %v3552_v41 = vld [vmem:[%s5410_s1 + $0x4cc] sm:$0xf] }
  0x7a   :  { %v2655_v33 = vld [vmem:[%s5410_s1 + $0x2d8] sm:$0xf0] }
  0x7b   :  { %1470 = vmatpush.bf16.msra.mxu2 %v2734_v11  ;;  %v3550_v11 = vld [vmem:[%s5410_s1 + $0x4b4] sm:$0xf0]  ;;  %v2911_v44 = vld [vmem:[%s5410_s1 + $0x4d8] sm:$0xf0] }
  0x7c   :  { %1432 = vmatpush.bf16.msrb.mxu1 %v2334_v12  ;;  %1445 = vmatpush.bf16.msrb.mxu3 %v2462_v17  ;;  %v3021_v12 = vld [vmem:[%s5410_s1 + $0x5a8] sm:$0xf]  ;;  %v2894_v17 = vor.u32 %v3550_v11, %v2893_v10  ;;  %v3440_v10 = vld [vmem:[%s5410_s1 + $0x14c] sm:$0xf]  ;;  %v2463_v11 = vld [vmem:[%s5410_s1 + $0x158] sm:$0xf0] }
  0x7d   :  { %1458 = vmatpush.bf16.msra.mxu0 %v2590_v29  ;;  %v3022_v21 = vor.u32 %v3582_v13, %v3021_v12  ;;  %v2813_v13 = vld [vmem:[%s5410_s1 + $0x408] sm:$0xf]  ;;  %v2431_v50 = vld [vmem:[%s5410_s1 + $0x118] sm:$0xf0] }
  0x7e   :  { %v2767_v51 = vld [vmem:[%s5410_s1 + $0x3b8] sm:$0xf0] }
  0x7f   :  { %1471 = vmatpush.bf16.msra.mxu2 %v2718_v23  ;;  %v3546_v23 = vld [vmem:[%s5410_s1 + $0x494] sm:$0xf0] }
  0x80   :  { %1433 = vmatpush.bf16.msrb.mxu1 %v2318_v25  ;;  %1446 = vmatpush.bf16.msrb.mxu3 %v2446_v30  ;;  %v3578_v25 = vld [vmem:[%s5410_s1 + $0x594] sm:$0xf0]  ;;  %v2878_v29 = vor.u32 %v3546_v23, %v2877_v22  ;;  %v2367_v30 = vld [vmem:[%s5410_s1 + $0x98] sm:$0xf0]  ;;  %v2466_v22 = vor.u32 %v3440_v10, %v2463_v11 }
  0x81   :  { %1459 = vmatpush.bf16.msra.mxu0 %v2574_v45  ;;  %v3006_v34 = vor.u32 %v3578_v25, %v3005_v24  ;;  %v2370_v40 = vor.u32 %v3416_v27, %v2367_v30  ;;  %v3448_v45 = vld [vmem:[%s5410_s1 + $0x18c] sm:$0xf]  ;;  %v2303_v25 = vld [vmem:[%s5410_s1 + $0x18] sm:$0xf0] }
  0x82   :  { %v2498_v55 = vor.u32 %v3448_v45, %v2495_v46  ;;  %v3400_v24 = vld [vmem:[%s5410_s1 + $0xc] sm:$0xf]  ;;  %v2639_v46 = vld [vmem:[%s5410_s1 + $0x2b8] sm:$0xf0] }
  0x83   :  { %1472 = vmatpush.bf16.msra.mxu2 %v2702_v39  ;;  %v3574_v39 = vld [vmem:[%s5410_s1 + $0x574] sm:$0xf0]  ;;  %v3488_v30 = vld [vmem:[%s5410_s1 + $0x2cc] sm:$0xf]  ;;  %v2879_v10 = vld [vmem:[%s5410_s1 + $0x498] sm:$0xf0] }
  0x84   :  { %1434 = vmatpush.bf16.msrb.mxu1 %v2302_v43  ;;  %1447 = vmatpush.bf16.msrb.mxu3 %v2430_v48  ;;  %v2862_v43 = vor.u32 %v3542_v36, %v2861_v35  ;;  %v2990_v47 = vor.u32 %v3574_v39, %v2989_v38  ;;  %v2845_v48 = vld [vmem:[%s5410_s1 + $0x448] sm:$0xf]  ;;  %v2447_v35 = vld [vmem:[%s5410_s1 + $0x138] sm:$0xf0]  ;;  %v2306_v36 = vor.u32 %v3400_v24, %v2303_v25  ;;  %v3520_v38 = vld [vmem:[%s5410_s1 + $0x3cc] sm:$0xf] }
  0x85   :  { %1460 = vmatpush.bf16.msra.mxu0 %v2558_v1  ;;  %v3534_v1 = vld [vmem:[%s5410_s1 + $0x434] sm:$0xf0]  ;;  %v2783_v39 = vld [vmem:[%s5410_s1 + $0x3d8] sm:$0xf0]  ;;  %v3484_v45 = vld [vmem:[%s5410_s1 + $0x2ac] sm:$0xf] }
  0x87   :  { %1473 = vmatpush.bf16.msra.mxu2 %v2686_v60  ;;  %1435 = vmatmul.bf16.vlgmr.msrb.gmra.mxu1 %v3961_v56  ;;  %v3444_v60 = vld [vmem:[%s5410_s1 + $0x16c] sm:$0xf] }
  0x88   :  { %1479 = vmatpush.bf16.msra.mxu1 %v2926_v49  ;;  %1492 = vmatpush.bf16.msra.mxu3 %v3054_v53  ;;  %v3538_v49 = vld [vmem:[%s5410_s1 + $0x454] sm:$0xf0]  ;;  %v3408_v53 = vld [vmem:[%s5410_s1 + $0x4c] sm:$0xf]  ;;  %v2482_v7 = vor.u32 %v3444_v60, %v2479_v62  ;;  %v2895_v62 = vld [vmem:[%s5410_s1 + $0x4b8] sm:$0xf0] }
  0x89   :  { %1512 = vmatpush.bf16.msrb.mxu0 %v3070_v6  ;;  %1448 = vmatmul.bf16.vlgmr.msrb.gmra.mxu3 %v3982_v5  ;;  %v2846_v57 = vor.u32 %v3538_v49, %v2845_v48  ;;  %v2338_v4 = vor.u32 %v3408_v53, %v2335_v58  ;;  %v3404_v6 = vld [vmem:[%s5410_s1 + $0x2c] sm:$0xf]  ;;  %v3055_v53 = vld [vmem:[%s5410_s1 + $0x5f8] sm:$0xf0] }
  0x8a   :  { %1474 = vmatmul.bf16.vlgmr.msra.gmra.mxu2 %v3963_v61  ;;  %1461 = vmatmul.bf16.vlgmr.msra.gmra.mxu0 %v3959_v54  ;;  %v3516_v48 = vld [vmem:[%s5410_s1 + $0x3ac] sm:$0xf] }
  0x8b   :  { %1518 = vmatpush.bf16.msrb.mxu2 %v2418_v0  ;;  %v2829_v0 = vld [vmem:[%s5410_s1 + $0x428] sm:$0xf]  ;;  %v3432_v49 = vld [vmem:[%s5410_s1 + $0x10c] sm:$0xf] }
  0x8c   :  { %1480 = vmatpush.bf16.msra.mxu1 %v2910_v3  ;;  %1493 = vmatpush.bf16.msra.mxu3 %v3038_v9  ;;  %v3566_v3 = vld [vmem:[%s5410_s1 + $0x534] sm:$0xf0]  ;;  %v2830_v8 = vor.u32 %v3534_v1, %v2829_v0  ;;  %v2319_v9 = vld [vmem:[%s5410_s1 + $0x38] sm:$0xf0]  ;;  %v2434_v58 = vor.u32 %v3432_v49, %v2431_v50  ;;  %v3548_v60 = vld [vmem:[%s5410_s1 + $0x4ac] sm:$0xf] }
  0x8d   :  { %1531 = vmatpush.bf16.msra.mxu0 %v2546_v16  ;;  %v2958_v12 = vor.u32 %v3566_v3, %v2957_v2  ;;  %v3562_v16 = vld [vmem:[%s5410_s1 + $0x514] sm:$0xf0]  ;;  %v2322_v19 = vor.u32 %v3404_v6, %v2319_v9  ;;  %v3480_v1 = vld [vmem:[%s5410_s1 + $0x28c] sm:$0xf]  ;;  %v2623_v2 = vld [vmem:[%s5410_s1 + $0x298] sm:$0xf0] }
  0x8e   :  { %v3512_v3 = vld [vmem:[%s5410_s1 + $0x38c] sm:$0xf]  ;;  %v3039_v6 = vld [vmem:[%s5410_s1 + $0x5d8] sm:$0xf0] }
  0x8f   :  { %1519 = vmatpush.bf16.msrb.mxu2 %v2402_v14  ;;  %v3530_v14 = vld [vmem:[%s5410_s1 + $0x414] sm:$0xf0]  ;;  %v3544_v9 = vld [vmem:[%s5410_s1 + $0x48c] sm:$0xf] }
  0x90   :  { %1481 = vmatpush.bf16.msra.mxu1 %v2894_v17  ;;  %1494 = vmatpush.bf16.msra.mxu3 %v3022_v21  ;;  %v3492_v17 = vld [vmem:[%s5410_s1 + $0x2ec] sm:$0xf]  ;;  %v2799_v21 = vld [vmem:[%s5410_s1 + $0x3f8] sm:$0xf0]  ;;  %v2814_v23 = vor.u32 %v3530_v14, %v2813_v13 }
  0x91   :  { %1532 = vmatpush.bf16.msra.mxu0 %v2530_v28  ;;  %v2674_v27 = vor.u32 %v3492_v17, %v2671_v18  ;;  %v3556_v28 = vld [vmem:[%s5410_s1 + $0x4ec] sm:$0xf]  ;;  %v2802_v31 = vor.u32 %v3524_v20, %v2799_v21  ;;  %v2607_v14 = vld [vmem:[%s5410_s1 + $0x278] sm:$0xf0]  ;;  %v2882_v20 = vor.u32 %v3544_v9, %v2879_v10 }
  0x92   :  { %v3476_v13 = vld [vmem:[%s5410_s1 + $0x26c] sm:$0xf]  ;;  %v2735_v17 = vld [vmem:[%s5410_s1 + $0x378] sm:$0xf0] }
  0x93   :  { %1520 = vmatpush.bf16.msrb.mxu2 %v2386_v26  ;;  %v2942_v26 = vor.u32 %v3562_v16, %v2941_v15  ;;  %v3508_v15 = vld [vmem:[%s5410_s1 + $0x36c] sm:$0xf]  ;;  %v2610_v21 = vor.u32 %v3476_v13, %v2607_v14 }
  0x94   :  { %1482 = vmatpush.bf16.msra.mxu1 %v2878_v29  ;;  %1495 = vmatpush.bf16.msra.mxu3 %v3006_v34  ;;  %v2927_v29 = vld [vmem:[%s5410_s1 + $0x4f8] sm:$0xf0]  ;;  %v3436_v34 = vld [vmem:[%s5410_s1 + $0x12c] sm:$0xf]  ;;  %v2738_v24 = vor.u32 %v3508_v15, %v2735_v17 }
  0x95   :  { %1533 = vmatpush.bf16.msra.mxu0 %v2514_v42  ;;  %v2658_v42 = vor.u32 %v3488_v30, %v2655_v33  ;;  %v3580_v18 = vld [vmem:[%s5410_s1 + $0x5ac] sm:$0xf]  ;;  %v3071_v17 = vld [vmem:[%s5410_s1 + $0x618] sm:$0xf0] }
  0x96   :  { %v3576_v30 = vld [vmem:[%s5410_s1 + $0x58c] sm:$0xf] }
  0x97   :  { %1521 = vmatpush.bf16.msrb.mxu2 %v2370_v40  ;;  %v2930_v40 = vor.u32 %v3556_v28, %v2927_v29  ;;  %v2719_v29 = vld [vmem:[%s5410_s1 + $0x358] sm:$0xf0]  ;;  %v3592_v15 = vld [vmem:[%s5410_s1 + $0x60c] sm:$0xf] }
  0x98   :  { %1483 = vmatpush.bf16.msra.mxu1 %v2862_v43  ;;  %1496 = vmatpush.bf16.msra.mxu3 %v2990_v47  ;;  %v2450_v43 = vor.u32 %v3436_v34, %v2447_v35  ;;  %v2786_v47 = vor.u32 %v3520_v38, %v2783_v39  ;;  %v4873_v34 = vld [vmem:[%s5412_s2] sm:$0xf]  ;;  %v3536_v38 = vld [vmem:[%s5410_s1 + $0x44c] sm:$0xf]  ;;  %v2847_v39 = vld [vmem:[%s5410_s1 + $0x458] sm:$0xf0] }
  0x99   :  { %1534 = vmatpush.bf16.msra.mxu0 %v2498_v55  ;;  %v2914_v55 = vor.u32 %v3552_v41, %v2911_v44  ;;  %v2575_v44 = vld [vmem:[%s5410_s1 + $0x238] sm:$0xf0]  ;;  %v253_v50 = vperm.slane %v4873_v34, 0 }
  0x9a   :  { %3077 = vmatmul.msk.bf16.vlgmr.msrb.gmra.mxu0 %vm1241_vm0, %v4088_v59 }
  0x9b   :  { %1522 = vmatpush.bf16.msrb.mxu2 %v2354_v52  ;;  %v3588_v52 = vld [vmem:[%s5410_s1 + $0x5ec] sm:$0xf] }
  0x9c   :  { %1484 = vmatpush.bf16.msra.mxu1 %v2846_v57  ;;  %1497 = vmatpush.bf16.msra.mxu3 %v2974_v63  ;;  %v2642_v57 = vor.u32 %v3484_v45, %v2639_v46  ;;  %v2770_v63 = vor.u32 %v3516_v48, %v2767_v51  ;;  %v3058_v0 = vor.u32 %v3588_v52, %v3055_v53  ;;  %v3500_v45 = vld [vmem:[%s5410_s1 + $0x32c] sm:$0xf]  ;;  %v2703_v46 = vld [vmem:[%s5410_s1 + $0x338] sm:$0xf0] }
  0x9d   :  { %1535 = vmatpush.bf16.msra.mxu0 %v2482_v7  ;;  %v2898_v7 = vor.u32 %v3548_v60, %v2895_v62  ;;  %v2991_v48 = vld [vmem:[%s5410_s1 + $0x578] sm:$0xf0]  ;;  %v2850_v51 = vor.u32 %v3536_v38, %v2847_v39  ;;  %v3532_v53 = vld [vmem:[%s5410_s1 + $0x42c] sm:$0xf]  ;;  %v3121_v38 = vld [vmem:[%s5413_s3 + $0x50] sm:$0xf] }
  0x9e   :  { %v2559_v62 = vld [vmem:[%s5410_s1 + $0x218] sm:$0xf0] }
  0x9f   :  { %1523 = vmatpush.bf16.msrb.mxu2 %v2338_v4  ;;  %v2751_v4 = vld [vmem:[%s5410_s1 + $0x398] sm:$0xf0] }
  0xa0   :  { %1485 = vmatpush.bf16.msra.mxu1 %v2830_v8  ;;  %1498 = vmatpush.bf16.msra.mxu3 %v2958_v12  ;;  %v2626_v8 = vor.u32 %v3480_v1, %v2623_v2  ;;  %v2754_v11 = vor.u32 %v3512_v3, %v2751_v4  ;;  %v3137_v1 = vld [vmem:[%s5413_s3 + $0x70] sm:$0xf]  ;;  %v3568_v2 = vld [vmem:[%s5410_s1 + $0x54c] sm:$0xf]  ;;  %v2975_v3 = vld [vmem:[%s5410_s1 + $0x558] sm:$0xf0] }
  0xa1   :  { %1536 = vmatpush.bf16.msra.mxu0 %v2466_v22  ;;  %v3540_v22 = vld [vmem:[%s5410_s1 + $0x46c] sm:$0xf]  ;;  %v2978_v14 = vor.u32 %v3568_v2, %v2975_v3  ;;  %v3161_v2 = vld [vmem:[%s5413_s3 + $0xa0] sm:$0xf]  ;;  %v3616_v3 = vld [vmem:[%s5413_s3 + $0xa4] sm:$0xf0] }
  0xa3   :  { %1524 = vmatpush.bf16.msrb.mxu2 %v2322_v19  ;;  %v3023_v19 = vld [vmem:[%s5410_s1 + $0x5b8] sm:$0xf0] }
  0xa4   :  { %1486 = vmatpush.bf16.msra.mxu1 %v2814_v23  ;;  %1499 = vmatpush.bf16.msra.mxu3 %v2942_v26  ;;  %v2863_v23 = vld [vmem:[%s5410_s1 + $0x478] sm:$0xf0]  ;;  %v3026_v25 = vor.u32 %v3580_v18, %v3023_v19  ;;  %v3472_v26 = vld [vmem:[%s5410_s1 + $0x24c] sm:$0xf] }
  0xa5   :  { %1537 = vmatpush.bf16.msra.mxu0 %v2450_v43  ;;  %v2866_v33 = vor.u32 %v3540_v22, %v2863_v23  ;;  %v3468_v43 = vld [vmem:[%s5410_s1 + $0x22c] sm:$0xf]  ;;  %v2959_v22 = vld [vmem:[%s5410_s1 + $0x538] sm:$0xf0] }
  0xa6   :  { %v2578_v52 = vor.u32 %v3468_v43, %v2575_v44 }
  0xa7   :  { %1487 = vmatmul.bf16.vlgmr.msra.gmra.mxu1 %v4155_v32  ;;  %1525 = vmatpush.bf16.msrb.mxu2 %v2306_v36  ;;  %v4832_v16 = vpop.f32.mrf.mxu0 }
  0xa8   :  { %1544 = vmatpush.bf16.msrb.mxu1 %v2674_v27  ;;  %1557 = vmatpush.bf16.msrb.mxu3 %v2802_v31  ;;  %v3504_v27 = vld [vmem:[%s5410_s1 + $0x34c] sm:$0xf]  ;;  %v3007_v31 = vld [vmem:[%s5410_s1 + $0x598] sm:$0xf0]  ;;  %v1255_v19 = vadd.f32 %v4832_v16, %v253_v50  ;;  %v3608_v16 = vld [vmem:[%s5413_s3 + $0x64] sm:$0xf0] }
  0xa9   :  { %1500 = vmatmul.bf16.vlgmr.msra.gmra.mxu3 %v4166_v37  ;;  %1538 = vmatpush.bf16.msra.mxu0 %v2434_v58  ;;  %v2722_v41 = vor.u32 %v3504_v27, %v2719_v29  ;;  %v2706_v58 = vor.u32 %v3500_v45, %v2703_v46  ;;  %v3624_v27 = vld [vmem:[%s5413_s3 + $0xe4] sm:$0xf0] }
  0xaa   :  { %1526 = vmatmul.bf16.vlgmr.msrb.gmra.mxu2 %v3961_v56  ;;  %v3584_v56 = vld [vmem:[%s5410_s1 + $0x5cc] sm:$0xf]  ;;  %v4859_v28 = vpop.f32.mrf.mxu1  ;;  %v3604_v45 = vld [vmem:[%s5413_s3 + $0x44] sm:$0xf0] }
  0xab   :  { %1570 = vmatpush.bf16.msra.mxu2 %v2930_v40  ;;  %v3042_v12 = vor.u32 %v3584_v56, %v3039_v6  ;;  %v3610_v6 = vld [vmem:[%s5413_s3 + $0x74] sm:$0xf0] }
  0xac   :  { %1545 = vmatpush.bf16.msrb.mxu1 %v2658_v42  ;;  %1558 = vmatpush.bf16.msrb.mxu3 %v2786_v47  ;;  %v3010_v42 = vor.u32 %v3576_v30, %v3007_v31  ;;  %v3572_v47 = vld [vmem:[%s5410_s1 + $0x56c] sm:$0xf]  ;;  %v1268_v30 = vadd.f32 %v4859_v28, %v1255_v19  ;;  %v3606_v28 = vld [vmem:[%s5413_s3 + $0x54] sm:$0xf0]  ;;  %v3139_v19 = vld [vmem:[%s5413_s3 + $0x78] sm:$0xf0] }
  0xad   :  { %1583 = vmatpush.bf16.msrb.mxu0 %v3058_v0  ;;  %v4875_v35 = vpop.f32.mrf.mxu2  ;;  %v2994_v60 = vor.u32 %v3572_v47, %v2991_v48  ;;  %v2687_v0 = vld [vmem:[%s5410_s1 + $0x318] sm:$0xf0]  ;;  %v3122_v44 = vor.u32 %v3606_v28, %v3121_v38  ;;  %v3177_v48 = vld [vmem:[%s5413_s3 + $0xc0] sm:$0xf]  ;;  %v3195_v38 = vld [vmem:[%s5413_s3 + $0xe8] sm:$0xf0] }
  0xae   :  { %1539 = vmatmul.bf16.vlgmr.msra.gmra.mxu0 %v3982_v5  ;;  %v2591_v5 = vld [vmem:[%s5410_s1 + $0x258] sm:$0xf0]  ;;  %v4883_v40 = vpop.f32.mrf.mxu3  ;;  %v1281_v43 = vadd.f32 %v4875_v35, %v1268_v30  ;;  %v3607_v30 = vld [vmem:[%s5413_s3 + $0x64] sm:$0xf]  ;;  %v254_v28 = vperm.slane %v4873_v34, 1 }
  0xaf   :  { %1571 = vmatpush.bf16.msra.mxu2 %v2914_v55  ;;  %v2594_v36 = vor.u32 %v3472_v26, %v2591_v5  ;;  %v1256_v49 = vpop.f32.mrf.mxu0  ;;  %v2831_v55 = vld [vmem:[%s5410_s1 + $0x438] sm:$0xf0]  ;;  %v3074_v26 = vor.u32 %v3592_v15, %v3071_v17  ;;  %v3193_v5 = vld [vmem:[%s5413_s3 + $0xe0] sm:$0xf]  ;;  %v3596_v17 = vld [vmem:[%s5413_s3 + $0x4] sm:$0xf0] }
  0xb0   :  { %1546 = vmatpush.bf16.msrb.mxu1 %v2642_v57  ;;  %1559 = vmatpush.bf16.msrb.mxu3 %v2770_v63  ;;  %v3464_v57 = vld [vmem:[%s5410_s1 + $0x20c] sm:$0xf]  ;;  %v2834_v56 = vor.u32 %v3532_v53, %v2831_v55  ;;  %v3194_v39 = vor.u32 %v3624_v27, %v3193_v5  ;;  %v1294_v35 = vadd.f32 %v4883_v40, %v1281_v43  ;;  %v3169_v40 = vld [vmem:[%s5413_s3 + $0xb0] sm:$0xf]  ;;  %v3081_v15 = vld [vmem:[%s5413_s3] sm:$0xf] }
  0xb1   :  { %1584 = vmatpush.bf16.msrb.mxu0 %v3042_v12  ;;  %v3496_v63 = vld [vmem:[%s5410_s1 + $0x30c] sm:$0xf]  ;;  %v2562_v10 = vor.u32 %v3464_v57, %v2559_v62  ;;  %v2815_v12 = vld [vmem:[%s5410_s1 + $0x418] sm:$0xf0]  ;;  %v3097_v62 = vld [vmem:[%s5413_s3 + $0x20] sm:$0xf] }
  0xb2   :  { %v1269_v4 = vpop.f32.mrf.mxu1  ;;  %v2690_v13 = vor.u32 %v3496_v63, %v2687_v0  ;;  %v3600_v63 = vld [vmem:[%s5413_s3 + $0x24] sm:$0xf0] }
  0xb3   :  { %1572 = vmatpush.bf16.msra.mxu2 %v2898_v7  ;;  %v3201_v7 = vld [vmem:[%s5413_s3 + $0xf0] sm:$0xf]  ;;  %v3098_v4 = vor.u32 %v3600_v63, %v3097_v62  ;;  %v3638_v62 = vld [vmem:[%s5413_s3 + $0x154] sm:$0xf0] }
  0xb4   :  { %1547 = vmatpush.bf16.msrb.mxu1 %v2626_v8  ;;  %1560 = vmatpush.bf16.msrb.mxu3 %v2754_v11  ;;  %v3626_v8 = vld [vmem:[%s5413_s3 + $0xf4] sm:$0xf0]  ;;  %v3528_v11 = vld [vmem:[%s5410_s1 + $0x40c] sm:$0xf] }
  0xb5   :  { %1585 = vmatpush.bf16.msrb.mxu0 %v3026_v25  ;;  %v1282_v9 = vpop.f32.mrf.mxu2  ;;  %v3202_v23 = vor.u32 %v3626_v8, %v3201_v7  ;;  %v3129_v25 = vld [vmem:[%s5413_s3 + $0x60] sm:$0xf] }
  0xb6   :  { %v1295_v18 = vpop.f32.mrf.mxu3  ;;  %v3130_v31 = vor.u32 %v3608_v16, %v3129_v25  ;;  %v3162_v9 = vor.u32 %v3616_v3, %v3161_v2  ;;  %v3203_v25 = vld [vmem:[%s5413_s3 + $0xf8] sm:$0xf0]  ;;  %v3082_v16 = vor.u32 %v3596_v17, %v3081_v15  ;;  %v3617_v3 = vld [vmem:[%s5413_s3 + $0xb4] sm:$0xf] }
  0xb7   :  { %1573 = vmatpush.bf16.msra.mxu2 %v2882_v20  ;;  %v3138_v20 = vor.u32 %v3610_v6, %v3137_v1  ;;  %v3598_v6 = vld [vmem:[%s5413_s3 + $0x14] sm:$0xf0]  ;;  %v3609_v18 = vld [vmem:[%s5413_s3 + $0x74] sm:$0xf] }
  0xb8   :  { %1548 = vmatpush.bf16.msrb.mxu1 %v2610_v21  ;;  %1561 = vmatpush.bf16.msrb.mxu3 %v2738_v24  ;;  %v3564_v21 = vld [vmem:[%s5410_s1 + $0x52c] sm:$0xf]  ;;  %v2818_v24 = vor.u32 %v3528_v11, %v2815_v12  ;;  %v3153_v12 = vld [vmem:[%s5413_s3 + $0x90] sm:$0xf] }
  0xb9   :  { %1586 = vmatpush.bf16.msrb.mxu0 %v3010_v42  ;;  %v2962_v29 = vor.u32 %v3564_v21, %v2959_v22  ;;  %v3145_v21 = vld [vmem:[%s5413_s3 + $0x80] sm:$0xf]  ;;  %v3612_v22 = vld [vmem:[%s5413_s3 + $0x84] sm:$0xf0] }
  0xba   :  { %v3146_v27 = vor.u32 %v3612_v22, %v3145_v21  ;;  %v3155_v22 = vld [vmem:[%s5413_s3 + $0x98] sm:$0xf0] }
  0xbb   :  { %1574 = vmatpush.bf16.msra.mxu2 %v2866_v33  ;;  %v3560_v33 = vld [vmem:[%s5410_s1 + $0x50c] sm:$0xf] }
  0xbc   :  { %1549 = vmatpush.bf16.msrb.mxu1 %v2594_v36  ;;  %1562 = vmatpush.bf16.msrb.mxu3 %v2722_v41  ;;  %v2943_v36 = vld [vmem:[%s5410_s1 + $0x518] sm:$0xf0]  ;;  %v3185_v41 = vld [vmem:[%s5413_s3 + $0xd0] sm:$0xf] }
  0xbd   :  { %1587 = vmatpush.bf16.msrb.mxu0 %v2994_v60  ;;  %v2946_v42 = vor.u32 %v3560_v33, %v2943_v36  ;;  %v1332_v47 = vpop.f32.mrf.mxu2  ;;  %v3623_v36 = vld [vmem:[%s5413_s3 + $0xe4] sm:$0xf] }
  0xbe   :  { %v3198_v43 = vor.u32 %v3623_v36, %v3195_v38  ;;  %v3611_v36 = vld [vmem:[%s5413_s3 + $0x84] sm:$0xf] }
  0xbf   :  { %1575 = vmatpush.bf16.msra.mxu2 %v2850_v51  ;;  %v3105_v51 = vld [vmem:[%s5413_s3 + $0x30] sm:$0xf] }
  0xc0   :  { %1550 = vmatpush.bf16.msrb.mxu1 %v2578_v52  ;;  %1563 = vmatpush.bf16.msrb.mxu3 %v2706_v58  ;;  %v3602_v52 = vld [vmem:[%s5413_s3 + $0x34] sm:$0xf0] }
  0xc1   :  { %1588 = vmatpush.bf16.msrb.mxu0 %v2978_v14  ;;  %v3618_v58 = vld [vmem:[%s5413_s3 + $0xb4] sm:$0xf0]  ;;  %v3106_v60 = vor.u32 %v3602_v52, %v3105_v51  ;;  %v3603_v51 = vld [vmem:[%s5413_s3 + $0x44] sm:$0xf]  ;;  %v3115_v52 = vld [vmem:[%s5413_s3 + $0x48] sm:$0xf0] }
  0xc2   :  { %v3118_v63 = vor.u32 %v3603_v51, %v3115_v52 }
  0xc3   :  { %1576 = vmatpush.bf16.msra.mxu2 %v2834_v56  ;;  %v1306_v50 = vpop.f32.mrf.mxu0  ;;  %v3089_v56 = vld [vmem:[%s5413_s3 + $0x10] sm:$0xf] }
  0xc4   :  { %1551 = vmatpush.bf16.msrb.mxu1 %v2562_v10  ;;  %1564 = vmatpush.bf16.msrb.mxu3 %v2690_v13  ;;  %v1307_v55 = vadd.f32 %v1306_v50, %v1294_v35  ;;  %v1319_v57 = vpop.f32.mrf.mxu1  ;;  %v3614_v13 = vld [vmem:[%s5413_s3 + $0x94] sm:$0xf0]  ;;  %v3090_v14 = vor.u32 %v3598_v6, %v3089_v56  ;;  %v3640_v50 = vld [vmem:[%s5413_s3 + $0x164] sm:$0xf0] }
  0xc5   :  { %1589 = vmatpush.bf16.msrb.mxu0 %v2962_v29  ;;  %v1334_v1 = vpop.f32.mrf.mxu2 }
  0xc6   :  { %v1320_v0 = vadd.f32 %v1319_v57, %v1307_v55  ;;  %v3619_v55 = vld [vmem:[%s5413_s3 + $0xc4] sm:$0xf]  ;;  %v3179_v57 = vld [vmem:[%s5413_s3 + $0xc8] sm:$0xf0] }
  0xc7   :  { %1552 = vmatmul.bf16.vlgmr.msrb.gmra.mxu1 %v3959_v54  ;;  %1577 = vmatpush.bf16.msra.mxu2 %v2818_v24  ;;  %v3622_v54 = vld [vmem:[%s5413_s3 + $0xd4] sm:$0xf0]  ;;  %v3625_v24 = vld [vmem:[%s5413_s3 + $0xf4] sm:$0xf]  ;;  %v3182_v1 = vor.u32 %v3619_v55, %v3179_v57  ;;  %v3209_v57 = vld [vmem:[%s5413_s3 + $0x100] sm:$0xf] }
  0xc8   :  { %2015 = vmatpush.bf16.msra.mxu3 %v3138_v20  ;;  %2028 = vmatpush.bf16.msra.mxu1 %v3202_v23  ;;  %v3186_v46 = vor.u32 %v3622_v54, %v3185_v41  ;;  %v1333_v10 = vadd.f32 %v1332_v47, %v1320_v0  ;;  %v3154_v20 = vor.u32 %v3614_v13, %v3153_v12  ;;  %v3605_v54 = vld [vmem:[%s5413_s3 + $0x54] sm:$0xf]  ;;  %v3107_v0 = vld [vmem:[%s5413_s3 + $0x38] sm:$0xf0]  ;;  %v3615_v12 = vld [vmem:[%s5413_s3 + $0xa4] sm:$0xf] }
  0xc9   :  { %1565 = vmatmul.bf16.vlgmr.msrb.gmra.mxu3 %v3963_v61  ;;  %v3113_v61 = vld [vmem:[%s5413_s3 + $0x40] sm:$0xf]  ;;  %1590 = vmatpush.bf16.msrb.mxu0 %v2946_v42  ;;  %v3206_v33 = vor.u32 %v3625_v24, %v3203_v25  ;;  %v3123_v42 = vld [vmem:[%s5413_s3 + $0x58] sm:$0xf0]  ;;  %v3163_v13 = vld [vmem:[%s5413_s3 + $0xa8] sm:$0xf0] }
  0xca   :  { %1578 = vmatmul.bf16.vlgmr.msra.gmra.mxu2 %v4155_v32  ;;  %v3620_v32 = vld [vmem:[%s5413_s3 + $0xc4] sm:$0xf0]  ;;  %v3114_v49 = vor.u32 %v3604_v45, %v3113_v61  ;;  %vm1609_vm1 = vcmp.gt.f32.partialorder %v1333_v10, 0.0  ;;  %v3621_v61 = vld [vmem:[%s5413_s3 + $0xd4] sm:$0xf] }
  0xcb   :  { %1603 = vmatpush.bf16.msrb.mxu2 %v3074_v26  ;;  %v3178_v53 = vor.u32 %v3620_v32, %v3177_v48  ;;  %v1308_v7 = vpop.f32.mrf.mxu0  ;;  %v3142_v26 = vor.u32 %v3609_v18, %v3139_v19  ;;  %v3187_v45 = vld [vmem:[%s5413_s3 + $0xd8] sm:$0xf0]  ;;  %v3642_v48 = vld [vmem:[%s5413_s3 + $0x174] sm:$0xf0]  ;;  %v3126_v32 = vor.u32 %v3605_v54, %v3123_v42  ;;  %v3597_v18 = vld [vmem:[%s5413_s3 + $0x14] sm:$0xf] }
  0xcc   :  { %2016 = vmatpush.bf16.msra.mxu3 %v3130_v31  ;;  %2029 = vmatpush.bf16.msra.mxu1 %v3194_v39  ;;  %v1345_v8 = vpop.f32.mrf.mxu3  ;;  %v1321_v11 = vpop.f32.mrf.mxu1  ;;  %v3131_v31 = vld [vmem:[%s5413_s3 + $0x68] sm:$0xf0]  ;;  %v3091_v19 = vld [vmem:[%s5413_s3 + $0x18] sm:$0xf0]  ;;  %v3636_v24 = vld [vmem:[%s5413_s3 + $0x144] sm:$0xf0] }
  0xcd   :  { %1591 = vmatmul.bf16.vlgmr.msrb.gmra.mxu0 %v4166_v37  ;;  %v3170_v37 = vor.u32 %v3618_v58, %v3169_v40  ;;  %v1358_v23 = vpop.f32.mrf.mxu2  ;;  %v3134_v41 = vor.u32 %v3607_v30, %v3131_v31  ;;  %v1346_v47 = vadd.f32 %v1345_v8, %v254_v28  ;;  %v3599_v8 = vld [vmem:[%s5413_s3 + $0x24] sm:$0xf]  ;;  %v3083_v31 = vld [vmem:[%s5413_s3 + $0x8] sm:$0xf0]  ;;  %v3225_v54 = vld [vmem:[%s5413_s3 + $0x120] sm:$0xf] }
  0xce   :  { %v3595_v30 = vld [vmem:[%s5413_s3 + $0x4] sm:$0xf]  ;;  %v3632_v42 = vld [vmem:[%s5413_s3 + $0x124] sm:$0xf0] }
  0xcf   :  { %v1359_v58 = vadd.f32 %v1358_v23, %v1346_v47  ;;  %v3241_v23 = vld [vmem:[%s5413_s3 + $0x140] sm:$0xf] }
  0xd0   :  { %2017 = vmatpush.bf16.msra.mxu3 %v3122_v44  ;;  %2030 = vmatpush.bf16.msra.mxu1 %v3186_v46  ;;  %v3265_v46 = vld [vmem:[%s5413_s3 + $0x170] sm:$0xf] }
  0xd1   :  { %v3266_v35 = vor.u32 %v3642_v48, %v3265_v46  ;;  %v3226_v46 = vor.u32 %v3632_v42, %v3225_v54  ;;  %v3217_v48 = vld [vmem:[%s5413_s3 + $0x110] sm:$0xf] }
  0xd3   :  { %2041 = vmatpush.bf16.msra.mxu2 %v3266_v35 }
  0xd4   :  { %2018 = vmatpush.bf16.msra.mxu3 %v3114_v49  ;;  %2031 = vmatpush.bf16.msra.mxu1 %v3178_v53  ;;  %v1347_v5 = vpop.f32.mrf.mxu3  ;;  %v3257_v49 = vld [vmem:[%s5413_s3 + $0x160] sm:$0xf]  ;;  %v3190_v53 = vor.u32 %v3621_v61, %v3187_v45 }
  0xd5   :  { %v1360_v44 = vpop.f32.mrf.mxu2  ;;  %v3258_v40 = vor.u32 %v3640_v50, %v3257_v49  ;;  %v3233_v5 = vld [vmem:[%s5413_s3 + $0x130] sm:$0xf] }
  0xd6   :  { %v3086_v44 = vor.u32 %v3595_v30, %v3083_v31 }
  0xd7   :  { %2042 = vmatpush.bf16.msra.mxu2 %v3258_v40  ;;  %v3628_v40 = vld [vmem:[%s5413_s3 + $0x104] sm:$0xf0] }
  0xd8   :  { %2019 = vmatpush.bf16.msra.mxu3 %v3106_v60  ;;  %2032 = vmatpush.bf16.msra.mxu1 %v3170_v37  ;;  %v3249_v60 = vld [vmem:[%s5413_s3 + $0x150] sm:$0xf]  ;;  %v3601_v37 = vld [vmem:[%s5413_s3 + $0x34] sm:$0xf] }
  0xd9   :  { %v3250_v56 = vor.u32 %v3638_v62, %v3249_v60  ;;  %v3110_v7 = vor.u32 %v3601_v37, %v3107_v0  ;;  %v3641_v60 = vld [vmem:[%s5413_s3 + $0x174] sm:$0xf]  ;;  %v3259_v37 = vld [vmem:[%s5413_s3 + $0x168] sm:$0xf0] }
  0xda   :  { %3078 = vmatmul.msk.bf16.vlgmr.msrb.gmra.mxu2 %vm1241_vm0, %v4088_v59  ;;  %v1613_v59 = vmul.f32 0.2, %v1333_v10 }
  0xdb   :  { %2043 = vmatpush.bf16.msra.mxu2 %v3250_v56 }
  0xdc   :  { %2020 = vmatpush.bf16.msra.mxu3 %v3098_v4  ;;  %2033 = vmatpush.bf16.msra.mxu1 %v3162_v9  ;;  %v1617_v29 = vsel %vm1609_vm1, %v1333_v10, %v1613_v59  ;;  %v3171_v4 = vld [vmem:[%s5413_s3 + $0xb8] sm:$0xf0]  ;;  %v3099_v9 = vld [vmem:[%s5413_s3 + $0x28] sm:$0xf0]  ;;  %v3613_v59 = vld [vmem:[%s5413_s3 + $0x94] sm:$0xf] }
  0xdd   :  { %v5083_v39 = vpack.c.bf16 %v1617_v29, %v1617_v29  ;;  %v3174_v10 = vor.u32 %v3617_v3, %v3171_v4  ;;  %v3102_v15 = vor.u32 %v3599_v8, %v3099_v9  ;;  %v3094_v29 = vor.u32 %v3597_v18, %v3091_v19  ;;  %v3637_v3 = vld [vmem:[%s5413_s3 + $0x154] sm:$0xf]  ;;  %v3251_v4 = vld [vmem:[%s5413_s3 + $0x158] sm:$0xf0]  ;;  %v3243_v8 = vld [vmem:[%s5413_s3 + $0x148] sm:$0xf0] }
  0xde   :  { %v3254_v56 = vor.u32 %v3637_v3, %v3251_v4  ;;  %v3658_v18 = vld [vmem:[%s5413_s3 + $0x1f4] sm:$0xf0]  ;;  %v3657_v3 = vld [vmem:[%s5413_s3 + $0x1f4] sm:$0xf]  ;;  %v3331_v4 = vld [vmem:[%s5413_s3 + $0x1f8] sm:$0xf0] }
  0xe0   :  { %2021 = vmatpush.bf16.msra.mxu3 %v3090_v14  ;;  %2034 = vmatpush.bf16.msra.mxu1 %v3154_v20  ;;  %v3166_v20 = vor.u32 %v3615_v12, %v3163_v13  ;;  %v3633_v13 = vld [vmem:[%s5413_s3 + $0x134] sm:$0xf] }
  0xe3   :  { %v1371_v2 = vpop.f32.mrf.mxu0 }
  0xe4   :  { %2022 = vmatpush.bf16.msra.mxu3 %v3082_v16  ;;  %2035 = vmatpush.bf16.msra.mxu1 %v3146_v27  ;;  %v1372_v6 = vadd.f32 %v1371_v2, %v1359_v58  ;;  %v3634_v27 = vld [vmem:[%s5413_s3 + $0x134] sm:$0xf0]  ;;  %v3210_v58 = vor.u32 %v3628_v40, %v3209_v57 }
  0xe5   :  { %v3234_v38 = vor.u32 %v3634_v27, %v3233_v5  ;;  %v3313_v27 = vld [vmem:[%s5413_s3 + $0x1d0] sm:$0xf] }
  0xe6   :  { %v1384_v11 = vpop.f32.mrf.mxu1 }
  0xe7   :  { %2023 = vmatmul.bf16.vlgmr.msra.gmra.mxu3 %v5083_v39  ;;  %v1385_v14 = vadd.f32 %v1384_v11, %v1372_v6 }
  0xe8   :  { %2067 = vmatpush.bf16.msrb.mxu3 %v3142_v26  ;;  %2080 = vmatpush.bf16.msrb.mxu1 %v3206_v33  ;;  %v3242_v26 = vor.u32 %v3636_v24, %v3241_v23  ;;  %v3158_v33 = vor.u32 %v3613_v59, %v3155_v22  ;;  %v3227_v59 = vld [vmem:[%s5413_s3 + $0x128] sm:$0xf0]  ;;  %v3656_v23 = vld [vmem:[%s5413_s3 + $0x1e4] sm:$0xf0] }
  0xea   :  { %v1397_v17 = vpop.f32.mrf.mxu3  ;;  %2044 = vmatpush.bf16.msra.mxu2 %v3242_v26  ;;  %v255_v26 = vperm.slane %v4873_v34, 2 }
  0xeb   :  { %v1373_v21 = vpop.f32.mrf.mxu0  ;;  %v1398_v25 = vadd.f32 %v1397_v17, %v1385_v14  ;;  %v3235_v14 = vld [vmem:[%s5413_s3 + $0x138] sm:$0xf0]  ;;  %v3329_v17 = vld [vmem:[%s5413_s3 + $0x1f0] sm:$0xf] }
  0xec   :  { %2068 = vmatpush.bf16.msrb.mxu3 %v3134_v41  ;;  %2081 = vmatpush.bf16.msrb.mxu1 %v3198_v43  ;;  %v3147_v41 = vld [vmem:[%s5413_s3 + $0x88] sm:$0xf0]  ;;  %v3330_v19 = vor.u32 %v3658_v18, %v3329_v17  ;;  %v3321_v21 = vld [vmem:[%s5413_s3 + $0x1e0] sm:$0xf]  ;;  %v3315_v17 = vld [vmem:[%s5413_s3 + $0x1d8] sm:$0xf0] }
  0xed   :  { %v1410_v16 = vpop.f32.mrf.mxu2  ;;  %v3150_v61 = vor.u32 %v3611_v36, %v3147_v41  ;;  %v3322_v24 = vor.u32 %v3656_v23, %v3321_v21  ;;  %v3211_v41 = vld [vmem:[%s5413_s3 + $0x108] sm:$0xf0]  ;;  %v3299_v23 = vld [vmem:[%s5413_s3 + $0x1b8] sm:$0xf0] }
  0xee   :  { %v1386_v28 = vpop.f32.mrf.mxu1  ;;  %v1411_v43 = vadd.f32 %v1410_v16, %v1398_v25  ;;  %2045 = vmatpush.bf16.msra.mxu2 %v3234_v38  ;;  %2054 = vmatpush.bf16.msra.mxu0 %v3330_v19  ;;  %v3629_v25 = vld [vmem:[%s5413_s3 + $0x114] sm:$0xf]  ;;  %v3219_v16 = vld [vmem:[%s5413_s3 + $0x118] sm:$0xf0]  ;;  %v3651_v19 = vld [vmem:[%s5413_s3 + $0x1c4] sm:$0xf] }
  0xef   :  { %v3222_v31 = vor.u32 %v3629_v25, %v3219_v16  ;;  %v3627_v28 = vld [vmem:[%s5413_s3 + $0x104] sm:$0xf]  ;;  %v256_v25 = vperm.slane %v4873_v34, 3 }
  0xf0   :  { %2069 = vmatpush.bf16.msrb.mxu3 %v3126_v32  ;;  %2082 = vmatpush.bf16.msrb.mxu1 %v3190_v53  ;;  %v3630_v32 = vld [vmem:[%s5413_s3 + $0x114] sm:$0xf0]  ;;  %v3214_v42 = vor.u32 %v3627_v28, %v3211_v41  ;;  %v3647_v16 = vld [vmem:[%s5413_s3 + $0x1a4] sm:$0xf] }
  0xf1   :  { %v3218_v51 = vor.u32 %v3630_v32, %v3217_v48  ;;  %v3297_v48 = vld [vmem:[%s5413_s3 + $0x1b0] sm:$0xf]  ;;  %v3650_v32 = vld [vmem:[%s5413_s3 + $0x1b4] sm:$0xf0]  ;;  %v3643_v41 = vld [vmem:[%s5413_s3 + $0x184] sm:$0xf] }
  0xf2   :  { %v1399_v45 = vpop.f32.mrf.mxu3  ;;  %2046 = vmatpush.bf16.msra.mxu2 %v3226_v46  ;;  %2055 = vmatpush.bf16.msra.mxu0 %v3322_v24 }
  0xf3   :  { %v1423_v47 = vpop.f32.mrf.mxu0 }
  0xf4   :  { %2070 = vmatpush.bf16.msrb.mxu3 %v3118_v63  ;;  %2083 = vmatpush.bf16.msrb.mxu1 %v3182_v1  ;;  %v1424_v35 = vadd.f32 %v1423_v47, %v1411_v43  ;;  %v3639_v63 = vld [vmem:[%s5413_s3 + $0x164] sm:$0xf]  ;;  %v3305_v43 = vld [vmem:[%s5413_s3 + $0x1c0] sm:$0xf] }
  0xf5   :  { %v1412_v49 = vpop.f32.mrf.mxu2  ;;  %v3262_v0 = vor.u32 %v3639_v63, %v3259_v37 }
  0xf6   :  { %vm1610_vm2 = vcmp.gt.f32.partialorder %v1424_v35, 0.0  ;;  %v1614_v50 = vmul.f32 0.2, %v1424_v35  ;;  %2047 = vmatpush.bf16.msra.mxu2 %v3218_v51  ;;  %v3648_v51 = vld [vmem:[%s5413_s3 + $0x1a4] sm:$0xf0] }
  0xf8   :  { %2071 = vmatpush.bf16.msrb.mxu3 %v3110_v7  ;;  %2084 = vmatpush.bf16.msrb.mxu1 %v3174_v10  ;;  %v1618_v52 = vsel %vm1610_vm2, %v1424_v35, %v1614_v50  ;;  %v3635_v7 = vld [vmem:[%s5413_s3 + $0x144] sm:$0xf]  ;;  %v3298_v35 = vor.u32 %v3650_v32, %v3297_v48  ;;  %v3289_v50 = vld [vmem:[%s5413_s3 + $0x1a0] sm:$0xf] }
  0xf9   :  { %v1622_v53 = vpack.c.bf16 %v1618_v52, %v1618_v52  ;;  %v3246_v10 = vor.u32 %v3635_v7, %v3243_v8  ;;  %v3290_v52 = vor.u32 %v3648_v51, %v3289_v50  ;;  %v3334_v7 = vor.u32 %v3657_v3, %v3331_v4  ;;  %v3655_v8 = vld [vmem:[%s5413_s3 + $0x1e4] sm:$0xf] }
  0xfa   :  { %2048 = vmatpush.bf16.msra.mxu2 %v3210_v58  ;;  %v3281_v58 = vld [vmem:[%s5413_s3 + $0x190] sm:$0xf] }
  0xfb   :  { %2036 = vmatmul.bf16.vlgmr.msra.gmra.mxu1 %v1622_v53  ;;  %v1425_v55 = vpop.f32.mrf.mxu0 }
  0xfc   :  { %2072 = vmatpush.bf16.msrb.mxu3 %v3102_v15  ;;  %2085 = vmatpush.bf16.msrb.mxu1 %v3166_v20  ;;  %v3238_v15 = vor.u32 %v3633_v13, %v3235_v14  ;;  %v3631_v20 = vld [vmem:[%s5413_s3 + $0x124] sm:$0xf] }
  0xfd   :  { %v3230_v22 = vor.u32 %v3631_v20, %v3227_v59  ;;  %v3307_v20 = vld [vmem:[%s5413_s3 + $0x1c8] sm:$0xf0] }
  0xfe   :  { %v3310_v59 = vor.u32 %v3651_v19, %v3307_v20  ;;  %v3671_v19 = vld [vmem:[%s5416_s5 + $0x60] sm:$0xff]  ;;  %v3670_v20 = vld [vmem:[%s5416_s5 + $0x58] sm:$0xff] }
 0x100   :  { %2073 = vmatpush.bf16.msrb.mxu3 %v3094_v29  ;;  %2086 = vmatpush.bf16.msrb.mxu1 %v3158_v33  ;;  %v3654_v29 = vld [vmem:[%s5413_s3 + $0x1d4] sm:$0xf0] }
 0x101   :  { %v3314_v36 = vor.u32 %v3654_v29, %v3313_v27  ;;  %v3645_v27 = vld [vmem:[%s5413_s3 + $0x194] sm:$0xf]  ;;  %v3283_v29 = vld [vmem:[%s5413_s3 + $0x198] sm:$0xf0] }
 0x103   :  { %2056 = vmatpush.bf16.msra.mxu0 %v3314_v36 }
 0x104   :  { %2074 = vmatpush.bf16.msrb.mxu3 %v3086_v44  ;;  %2087 = vmatpush.bf16.msrb.mxu1 %v3150_v61  ;;  %v1436_v1 = vpop.f32.mrf.mxu1  ;;  %v3652_v44 = vld [vmem:[%s5413_s3 + $0x1c4] sm:$0xf0] }
 0x105   :  { %v1437_v38 = vadd.f32 %v1436_v1, %v255_v26  ;;  %v3306_v61 = vor.u32 %v3652_v44, %v3305_v43  ;;  %v3273_v1 = vld [vmem:[%s5413_s3 + $0x180] sm:$0xf]  ;;  %v3291_v26 = vld [vmem:[%s5413_s3 + $0x1a8] sm:$0xf0] }
 0x107   :  { %2075 = vmatmul.bf16.vlgmr.msrb.gmra.mxu3 %v5083_v39  ;;  %v3267_v39 = vld [vmem:[%s5413_s3 + $0x178] sm:$0xf0]  ;;  %v1462_v2 = vpop.f32.mrf.mxu0  ;;  %2057 = vmatpush.bf16.msra.mxu0 %v3306_v61 }
 0x108   :  { %v3270_v62 = vor.u32 %v3641_v60, %v3267_v39  ;;  %v3646_v60 = vld [vmem:[%s5413_s3 + $0x194] sm:$0xf0] }
 0x109   :  { %v3282_v63 = vor.u32 %v3646_v60, %v3281_v58 }
 0x10a   :  { %2093 = vmatpush.bf16.msrb.mxu2 %v3270_v62 }
 0x10b   :  { %2088 = vmatmul.bf16.vlgmr.msrb.gmra.mxu1 %v1622_v53  ;;  %2058 = vmatpush.bf16.msra.mxu0 %v3298_v35 }
 0x10c   :  { %v1438_v6 = vpop.f32.mrf.mxu1  ;;  %v1449_v11 = vpop.f32.mrf.mxu3 }
 0x10d   :  { %v1475_v9 = vpop.f32.mrf.mxu2  ;;  %v1450_v54 = vadd.f32 %v1449_v11, %v1437_v38 }
 0x10e   :  { %2094 = vmatpush.bf16.msrb.mxu2 %v3262_v0 }
 0x10f   :  { %v1464_v12 = vpop.f32.mrf.mxu0  ;;  %v1463_v46 = vadd.f32 %v1462_v2, %v1450_v54  ;;  %2059 = vmatpush.bf16.msra.mxu0 %v3290_v52  ;;  %v3644_v2 = vld [vmem:[%s5413_s3 + $0x184] sm:$0xf0]  ;;  %v3275_v54 = vld [vmem:[%s5413_s3 + $0x188] sm:$0xf0] }
 0x110   :  { %v3274_v6 = vor.u32 %v3644_v2, %v3273_v1 }
 0x111   :  { %v1476_v49 = vadd.f32 %v1475_v9, %v1463_v46  ;;  %v3323_v9 = vld [vmem:[%s5413_s3 + $0x1e8] sm:$0xf0] }
 0x112   :  { %2095 = vmatpush.bf16.msrb.mxu2 %v3254_v56  ;;  %v3326_v14 = vor.u32 %v3655_v8, %v3323_v9  ;;  %v3674_v8 = vld [vmem:[%s5416_s5 + $0x78] sm:$0xff]  ;;  %v3663_v9 = vld [vmem:[%s5416_s5 + $0x20] sm:$0xff] }
 0x113   :  { %2060 = vmatpush.bf16.msra.mxu0 %v3282_v63  ;;  %2272 = vmatpush.bf16.msra.mxu1 %v3674_v8 }
 0x114   :  { %v1451_v30 = vpop.f32.mrf.mxu3 }
 0x115   :  { %v1477_v5 = vpop.f32.mrf.mxu2 }
 0x116   :  { %2096 = vmatpush.bf16.msrb.mxu2 %v3246_v10  ;;  %v3294_v5 = vor.u32 %v3647_v16, %v3291_v26 }
 0x117   :  { %v1514_v33 = vpop.f32.mrf.mxu0  ;;  %2061 = vmatpush.bf16.msra.mxu0 %v3274_v6  ;;  %v3665_v6 = vld [vmem:[%s5416_s5 + $0x30] sm:$0xff] }
 0x11a   :  { %2097 = vmatpush.bf16.msrb.mxu2 %v3238_v15  ;;  %v3653_v15 = vld [vmem:[%s5413_s3 + $0x1d4] sm:$0xf] }
 0x11b   :  { %2106 = vmatpush.bf16.msrb.mxu0 %v3334_v7  ;;  %v3318_v18 = vor.u32 %v3653_v15, %v3315_v17  ;;  %v3664_v7 = vld [vmem:[%s5416_s5 + $0x28] sm:$0xff] }
 0x11c   :  { %v3672_v15 = vld [vmem:[%s5416_s5 + $0x68] sm:$0xff] }
 0x11e   :  { %2098 = vmatpush.bf16.msrb.mxu2 %v3230_v22  ;;  %v3649_v22 = vld [vmem:[%s5413_s3 + $0x1b4] sm:$0xf] }
 0x11f   :  { %v1516_v45 = vpop.f32.mrf.mxu0  ;;  %2107 = vmatpush.bf16.msrb.mxu0 %v3326_v14  ;;  %v3302_v24 = vor.u32 %v3649_v22, %v3299_v23  ;;  %v3660_v14 = vld [vmem:[%s5416_s5 + $0x8] sm:$0xff] }
 0x120   :  { %v3668_v22 = vld [vmem:[%s5416_s5 + $0x48] sm:$0xff] }
 0x122   :  { %2099 = vmatpush.bf16.msrb.mxu2 %v3222_v31 }
 0x123   :  { %2108 = vmatpush.bf16.msrb.mxu0 %v3318_v18  ;;  %v3659_v18 = vld [vmem:[%s5416_s5] sm:$0xff] }
 0x124   :  { %v1488_v47 = vpop.f32.mrf.mxu1 }
 0x125   :  { %v1489_v53 = vadd.f32 %v1488_v47, %v1476_v49 }
 0x126   :  { %2100 = vmatpush.bf16.msrb.mxu2 %v3214_v42  ;;  %v3278_v42 = vor.u32 %v3643_v41, %v3275_v54 }
 0x127   :  { %2109 = vmatpush.bf16.msrb.mxu0 %v3310_v59 }
 0x12b   :  { %v1540_v62 = vpop.f32.mrf.mxu0  ;;  %2110 = vmatpush.bf16.msrb.mxu0 %v3302_v24  ;;  %v3667_v24 = vld [vmem:[%s5416_s5 + $0x40] sm:$0xff] }
 0x12c   :  { %v1501_v55 = vpop.f32.mrf.mxu3  ;;  %v1490_v40 = vpop.f32.mrf.mxu1 }
 0x12d   :  { %v1502_v57 = vadd.f32 %v1501_v55, %v1489_v53  ;;  %v1527_v39 = vpop.f32.mrf.mxu2 }
 0x12e   :  { %v1528_v30 = vadd.f32 %v1527_v39, %v256_v25 }
 0x12f   :  { %v1515_v37 = vadd.f32 %v1514_v33, %v1502_v57  ;;  %2111 = vmatpush.bf16.msrb.mxu0 %v3294_v5  ;;  %v3286_v33 = vor.u32 %v3645_v27, %v3283_v29  ;;  %v1689_v57 = vld [vmem:[%s5414_s4] sm:$0x3] }
 0x130   :  { %v1541_v28 = vadd.f32 %v1540_v62, %v1528_v30  ;;  %v1691_v40 = vperm.slane %v1689_v57, 0 }
 0x131   :  { %vm1611_vm3 = vcmp.gt.f32.partialorder %v1515_v37, 0.0  ;;  %v1615_v0 = vmul.f32 0.2, %v1515_v37 }
 0x133   :  { %v1619_v56 = vsel %vm1611_vm3, %v1515_v37, %v1615_v0  ;;  %v1542_v13 = vpop.f32.mrf.mxu0  ;;  %2112 = vmatpush.bf16.msrb.mxu0 %v3286_v33  ;;  %v1692_v37 = vperm.slane %v1689_v57, 1 }
 0x134   :  { %v1623_v10 = vpack.c.bf16 %v1619_v56, %v1619_v56  ;;  %v1503_v11 = vpop.f32.mrf.mxu3  ;;  %v3666_v56 = vld [vmem:[%s5416_s5 + $0x38] sm:$0xff]  ;;  %v3661_v13 = vld [vmem:[%s5416_s5 + $0x10] sm:$0xff] }
 0x135   :  { %v1529_v12 = vpop.f32.mrf.mxu2  ;;  %2259 = vmatpush.bf16.msra.mxu3 %v3666_v56  ;;  %v3662_v11 = vld [vmem:[%s5416_s5 + $0x18] sm:$0xff] }
 0x136   :  { %2049 = vmatmul.bf16.vlgmr.msra.gmra.mxu2 %v1623_v10 }
 0x137   :  { %2113 = vmatpush.bf16.msrb.mxu0 %v3278_v42  ;;  %v3675_v42 = vld [vmem:[%s5415_s6] ss:$0 sm:$0xff] }
 0x139   :  { %2260 = vmatpush.bf16.msra.mxu3 %v3665_v6 }
 0x13d   :  { %2261 = vmatpush.bf16.msra.mxu3 %v3664_v7 }
 0x141   :  { %2262 = vmatpush.bf16.msra.mxu3 %v3663_v9 }
 0x144   :  { %v1553_v21 = vpop.f32.mrf.mxu1 }
 0x145   :  { %v1554_v43 = vadd.f32 %v1553_v21, %v1541_v28  ;;  %2263 = vmatpush.bf16.msra.mxu3 %v3662_v11  ;;  %v3669_v21 = vld [vmem:[%s5416_s5 + $0x50] sm:$0xff] }
 0x146   :  { %2101 = vmatmul.bf16.vlgmr.msrb.gmra.mxu2 %v1623_v10  ;;  %v3673_v10 = vld [vmem:[%s5416_s5 + $0x70] sm:$0xff] }
 0x147   :  { %2273 = vmatpush.bf16.msra.mxu1 %v3673_v10 }
 0x149   :  { %2264 = vmatpush.bf16.msra.mxu3 %v3661_v13 }
 0x14a   :  { %v1592_v38 = vpop.f32.mrf.mxu0 }
 0x14b   :  { %2274 = vmatpush.bf16.msra.mxu1 %v3672_v15 }
 0x14c   :  { %v1566_v34 = vpop.f32.mrf.mxu3  ;;  %v1555_v31 = vpop.f32.mrf.mxu1 }
 0x14d   :  { %v1579_v36 = vpop.f32.mrf.mxu2  ;;  %v1567_v61 = vadd.f32 %v1566_v34, %v1554_v43  ;;  %2265 = vmatpush.bf16.msra.mxu3 %v3660_v14 }
 0x14f   :  { %v1580_v47 = vadd.f32 %v1579_v36, %v1567_v61  ;;  %2275 = vmatpush.bf16.msra.mxu1 %v3671_v19 }
 0x151   :  { %v1593_v48 = vadd.f32 %v1592_v38, %v1580_v47  ;;  %2266 = vmatpush.bf16.msra.mxu3 %v3659_v18 }
 0x152   :  { %v1594_v46 = vpop.f32.mrf.mxu0 }
 0x153   :  { %2276 = vmatpush.bf16.msra.mxu1 %v3670_v20 }
 0x154   :  { %v1568_v44 = vpop.f32.mrf.mxu3 }
 0x155   :  { %v1581_v45 = vpop.f32.mrf.mxu2 }
 0x157   :  { %2277 = vmatpush.bf16.msra.mxu1 %v3669_v21 }
 0x15b   :  { %2278 = vmatpush.bf16.msra.mxu1 %v3668_v22 }
 0x15d   :  { %v1605_v32 = vpop.f32.mrf.mxu2 }
 0x15e   :  { %v1606_v35 = vadd.f32 %v1605_v32, %v1593_v48 }
 0x15f   :  { %2279 = vmatpush.bf16.msra.mxu1 %v3667_v24 }
 0x160   :  { %vm1612_vm4 = vcmp.gt.f32.partialorder %v1606_v35, 0.0  ;;  %v1616_v49 = vmul.f32 0.2, %v1606_v35 }
 0x162   :  { %v1620_v50 = vsel %vm1612_vm4, %v1606_v35, %v1616_v49 }
 0x163   :  { %v1624_v51 = vpack.c.bf16 %v1620_v50, %v1620_v50 }
 0x165   :  { %v1607_v52 = vpop.f32.mrf.mxu2  ;;  %2062 = vmatmul.bf16.vlgmr.msra.gmra.mxu0 %v1624_v51 }
 0x16a   :  { %v2024_v53 = vpop.f32.mrf.mxu3 }
 0x16b   :  { %v2025_v58 = vadd.f32 %v2024_v53, %v1691_v40 }
 0x172   :  { %v2026_v55 = vpop.f32.mrf.mxu3 }
 0x175   :  { %2114 = vmatmul.bf16.vlgmr.msrb.gmra.mxu0 %v1624_v51 }
 0x178   :  { %v2037_v60 = vpop.f32.mrf.mxu1 }
 0x179   :  { %v2038_v39 = vadd.f32 %v2037_v60, %v2025_v58 }
 0x180   :  { %v2039_v63 = vpop.f32.mrf.mxu1 }
 0x188   :  { %v2089_v2 = vpop.f32.mrf.mxu1 }
 0x18a   :  { %v2076_v62 = vpop.f32.mrf.mxu3 }
 0x18b   :  { %v2077_v1 = vadd.f32 %v2076_v62, %v1692_v37 }
 0x18d   :  { %v2090_v3 = vadd.f32 %v2089_v2, %v2077_v1 }
 0x190   :  { %v2091_v4 = vpop.f32.mrf.mxu1 }
 0x192   :  { %v2078_v0 = vpop.f32.mrf.mxu3 }
 0x1b9   :  { %v2050_v12 = vpop.f32.mrf.mxu2 }
 0x1ba   :  { %v2051_v25 = vadd.f32 %v2050_v12, %v2038_v39 }
 0x1c1   :  { %v2052_v17 = vpop.f32.mrf.mxu2 }
 0x1c9   :  { %v2102_v59 = vpop.f32.mrf.mxu2 }
 0x1ca   :  { %v2103_v30 = vadd.f32 %v2102_v59, %v2090_v3 }
 0x1d1   :  { %v2104_v23 = vpop.f32.mrf.mxu2 }
 0x1e2   :  { %v2063_v16 = vpop.f32.mrf.mxu0 }
 0x1e3   :  { %v2064_v26 = vadd.f32 %v2063_v16, %v2051_v25 }
 0x1e5   :  { %vm2119_vm5 = vcmp.gt.f32.partialorder %v2064_v26, 0.0  ;;  %v2121_v5 = vmul.f32 0.2, %v2064_v26 }
 0x1e7   :  { %v2123_v27 = vsel %vm2119_vm5, %v2064_v26, %v2121_v5 }
 0x1e8   :  { %v2125_v29 = vpack.c.bf16 %v2123_v27, %v2123_v27 }
 0x1ea   :  { %v2065_v34 = vpop.f32.mrf.mxu0  ;;  %2267 = vmatmul.bf16.vlgmr.msra.gmra.mxu3 %v2125_v29 }
 0x1f2   :  { %v2115_v31 = vpop.f32.mrf.mxu0 }
 0x1f3   :  { %v2116_v33 = vadd.f32 %v2115_v31, %v2103_v30 }
 0x1f5   :  { %vm2120_vm6 = vcmp.gt.f32.partialorder %v2116_v33, 0.0  ;;  %v2122_v36 = vmul.f32 0.2, %v2116_v33 }
 0x1f7   :  { %v2124_v38 = vsel %vm2120_vm6, %v2116_v33, %v2122_v36 }
 0x1f8   :  { %v2126_v28 = vpack.c.bf16 %v2124_v38, %v2124_v38 }
 0x1fa   :  { %v2117_v41 = vpop.f32.mrf.mxu0  ;;  %2280 = vmatmul.bf16.vlgmr.msra.gmra.mxu1 %v2126_v28 }
 0x26d   :  { %v2268_v54 = vpop.f32.mrf.mxu3 }
 0x26e   :  { %v2269_v44 = vadd.f32 %v3675_v42, %v2268_v54 }
 0x275   :  { %v2270_v43 = vpop.f32.mrf.mxu3 }
 0x277   :  { %v2281_v61 = vpop.f32.mrf.mxu1 }
 0x278   :  { %v2282_v45 = vadd.f32 %v2281_v61, %v2269_v44 }
 0x27a   :  { %v2285_v46 = vpack.c.bf16 %v2282_v45, %v2282_v45 }
 0x27c   :  { %2286 = vst [vmem:[%s5417_s7] sm:$0x1] %v2285_v46 }
 0x27f   :  { %v2283_v47 = vpop.f32.mrf.mxu1 }

</bundles_post_ra>
